<compile_context>
chip_gen: v6e
topology: v6e:2x2x1
jax: 0.10.0
libtpu: 0.0.40
codegen_flags: <defaults>
</compile_context>

<pallas_src>
import functools

import jax
import jax.numpy as jnp
from jax.experimental import pallas as pl
from jax.experimental.pallas import tpu as pltpu

_NEG = -1e30   # finite "-inf" sentinel for the masked max-pool (f32 compute)
_FP = 128      # lane-padded width of the conv2 feature path (outfeat=16 -> 128 lanes)


def _vmem_limit_bytes():
    """Generation-aware scoped-VMEM limit (v5e/v6e: 128 MiB physical, v7x: 64 MiB/TC)."""
    cap = 64 * 1024 * 1024
    try:
        cap = int(getattr(pltpu.get_tpu_info(), "vmem_capacity_bytes", cap))
    except Exception:
        pass
    return max(32 * 1024 * 1024, min(cap - 16 * 1024 * 1024, 100 * 1024 * 1024))


_VMEM_LIMIT = _vmem_limit_bytes()
# Keep the whole [N_pad, N_pad] bf16 adjacency VMEM-resident below this size.
_A_RESIDENT_BYTES = 24 * 1024 * 1024


# ---------------------------------------------------------------------------
# Fused kernel: conv1+pool1 (phase 0), conv2+pool2+head (phase 1)
# ---------------------------------------------------------------------------
def _fused_gcn_kernel(
    # static (bound via functools.partial)
    num_graphs, tm, outfeat, a_resident,
    # inputs
    a_ref, xw1_ref, mask_ref, invc_ref,
    b1_ref, w2_ref, b2_ref,
    bn0s_ref, bn0b_ref, fc1w_ref, fc1b_ref,
    bn1s_ref, bn1b_ref, fc2w_ref, fc2b_ref,
    clsw_ref, clsb_ref,
    # outputs
    out_ref,
    # scratch
    hw2_ref, max1_ref, sum1_ref, max2_ref, sum2_ref,
):
    phase = pl.program_id(0)          # 0: conv1 + pool1,  1: conv2 + pool2 + head
    i = pl.program_id(1)              # adjacency row-tile index
    nt = pl.num_programs(1)
    row0 = pl.multiple_of(i * tm, tm)

    # Pre-tiled resident mask: [n_tiles, G, TM] -> this tile's [G, TM] membership.
    mtile = mask_ref[i]               # bf16 one-hot graph membership

    def a_tile():
        if a_resident:                # A fully resident: slice rows in VMEM
            return a_ref[pl.ds(row0, tm), :]
        return a_ref[...]             # streamed [TM, n_pad] row tile

    def masked_max_update(h, acc_ref):
        # Per-graph masked max -- no [G, TM, F] broadcast materialisation.
        for gi in range(num_graphs):
            m = mtile[gi, :]                                    # [TM]
            hm = jnp.where(m[:, None] > 0, h, _NEG)             # [TM, F]
            gm = jnp.max(hm, axis=0, keepdims=True)             # [1, F]
            acc_ref[gi:gi + 1, :] = jnp.maximum(acc_ref[gi:gi + 1, :], gm)

    # ----------------- phase 0: h = relu(A @ XW1 + b1); pool1; store H @ W2 ----------
    @pl.when(phase == 0)
    def _phase0():
        @pl.when(i == 0)
        def _init1():
            max1_ref[...] = jnp.full_like(max1_ref, _NEG)
            sum1_ref[...] = jnp.zeros_like(sum1_ref)

        a = a_tile()                                                        # [TM, Np] bf16
        h = jnp.dot(a, xw1_ref[...],
                    preferred_element_type=jnp.float32) + b1_ref[...]       # [TM, 64] f32
        h = jnp.maximum(h, 0.0)
        hb = h.astype(jnp.bfloat16)

        # pool-1 running accumulators
        masked_max_update(h, max1_ref)
        sum1_ref[...] += jnp.dot(mtile, hb, preferred_element_type=jnp.float32)

        # project to the (lane-padded) conv2 input space and keep it resident in VMEM
        hw2 = jnp.dot(hb, w2_ref[...], preferred_element_type=jnp.float32)  # [TM, 128]
        hw2_ref[pl.ds(row0, tm), :] = hw2.astype(jnp.bfloat16)              # lane-dense store

    # ----------------- phase 1: h2 = A @ (H@W2) + b2; pool2; MLP head -----------------
    @pl.when(phase == 1)
    def _phase1():
        @pl.when(i == 0)
        def _init2():
            max2_ref[...] = jnp.full_like(max2_ref, _NEG)
            sum2_ref[...] = jnp.zeros_like(sum2_ref)

        a = a_tile()
        h2 = jnp.dot(a, hw2_ref[...],
                     preferred_element_type=jnp.float32) + b2_ref[...]      # [TM, 128] f32

        masked_max_update(h2, max2_ref)
        sum2_ref[...] += jnp.dot(mtile, h2.astype(jnp.bfloat16),
                                 preferred_element_type=jnp.float32)

        # ---- final grid step: finish pooling, run GcnMlp + classifier + log_softmax ----
        @pl.when(i == nt - 1)
        def _head():
            invc = invc_ref[...]                                            # exact 1/count
            x1 = jnp.concatenate([max1_ref[...], sum1_ref[...] * invc], axis=1)
            x2 = jnp.concatenate([max2_ref[:, :outfeat],
                                  sum2_ref[:, :outfeat] * invc], axis=1)
            xf = jnp.concatenate([x1, x2], axis=1)                          # [G, 160]

            xf = xf * bn0s_ref[...] + bn0b_ref[...]                         # BNorm0 (eval)
            hh = jnp.dot(xf.astype(jnp.bfloat16), fc1w_ref[...],
                         preferred_element_type=jnp.float32) + fc1b_ref[...]
            hh = jnp.maximum(hh, 0.0)                                       # Act1
            # dropout (eval) -> identity
            hh = hh * bn1s_ref[...] + bn1b_ref[...]                         # BNorm1 (eval)
            hh = jnp.dot(hh.astype(jnp.bfloat16), fc2w_ref[...],
                         preferred_element_type=jnp.float32) + fc2b_ref[...]
            hh = jnp.maximum(hh, 0.0)                                       # Act2
            logits = jnp.dot(hh.astype(jnp.bfloat16), clsw_ref[...],
                             preferred_element_type=jnp.float32) + clsb_ref[...]
            z = logits - jnp.max(logits, axis=1, keepdims=True)
            lse = jnp.log(jnp.sum(jnp.exp(z), axis=1, keepdims=True))
            out_ref[...] = z - lse                                          # log_softmax


# ---------------------------------------------------------------------------
# Wrapper: graph densification, padding, single pallas_call
# ---------------------------------------------------------------------------
@functools.partial(jax.jit, static_argnames=("num_graphs", "nclass"))
def my_gcn_forward(params, x, edge_index, batch, edge_attr, num_graphs, nclass):
    n, _ = x.shape
    g = num_graphs

    nhid = params["conv1_w"].shape[1]           # 64
    outfeat = params["conv2_w"].shape[1]        # 16
    in_dim = params["fc1_w"].shape[0]           # 160
    mid = params["fc1_w"].shape[1]              # 256
    last = params["fc2_w"].shape[1]             # 32

    # ---- row-tile / padding geometry ------------------------------------------------
    n_pad = max(128, ((n + 127) // 128) * 128)
    tm = next(t for t in (512, 256, 128) if n_pad % t == 0)   # big tiles amortise step overhead
    n_tiles = n_pad // tm
    a_resident = (n_pad * n_pad * 2) <= _A_RESIDENT_BYTES     # A read from HBM once

    # ---- plain-JAX glue: edge NaN scrub, dense bf16 adjacency, pooling mask ---------
    ea = jnp.where(jnp.isnan(edge_attr), 0.0, edge_attr).astype(jnp.bfloat16)
    src, dst = edge_index[0], edge_index[1]
    adj = jnp.zeros((n_pad, n_pad), jnp.bfloat16).at[dst, src].add(ea)   # A[dst, src] = w

    # Precompute X @ W1 (tiny matmul) -> resident, lane-dense RHS for phase 0.
    xw1 = (jnp.zeros((n_pad, nhid), jnp.float32)
           .at[:n, :].set(x.astype(jnp.float32) @ params["conv1_w"])
           .astype(jnp.bfloat16))

    member = batch[None, :] == jnp.arange(g, dtype=batch.dtype)[:, None]      # [G, N]
    counts = jnp.sum(member, axis=1, keepdims=True).astype(jnp.float32)
    inv_counts = jnp.where(counts > 0, 1.0 / counts, 0.0)                     # exact, guards G=0
    mask_p = (jnp.zeros((g, n_pad), jnp.bfloat16)
              .at[:, :n].set(member.astype(jnp.bfloat16)))
    # Pre-tile to [n_tiles, G, TM] so the kernel grabs a tile with a leading-axis index.
    mask3 = mask_p.reshape(g, n_tiles, tm).transpose(1, 0, 2)

    # Lane-pad W2 / b2 from 16 -> 128 output lanes (zero-filled) for dense stores.
    w2p = (jnp.zeros((nhid, _FP), jnp.float32)
           .at[:, :outfeat].set(params["conv2_w"]).astype(jnp.bfloat16))
    b2p = jnp.zeros((1, _FP), jnp.float32).at[:, :outfeat].set(params["conv2_b"])

    bf = lambda k: params[k].astype(jnp.bfloat16)
    inputs = (
        adj, xw1, mask3, inv_counts,
        params["conv1_b"], w2p, b2p,
        params["bn0_scale"], params["bn0_shift"], bf("fc1_w"), params["fc1_b"],
        params["bn1_scale"], params["bn1_shift"], bf("fc2_w"), params["fc2_b"],
        bf("cls_w"), params["cls_b"],
    )

    if a_resident:
        a_spec = pl.BlockSpec((n_pad, n_pad), lambda p, i: (0, 0))            # resident
    else:
        a_spec = pl.BlockSpec((tm, n_pad), lambda p, i: (i, 0),
                              pipeline_mode=pl.Buffered(3))                   # streamed

    def full(arr):  # whole small array resident in VMEM across the grid
        return pl.BlockSpec(arr.shape, lambda p, i, nd=arr.ndim: (0,) * nd)

    in_specs = [
        a_spec,
        pl.BlockSpec((n_pad, nhid), lambda p, i: (0, 0)),      # XW1 (resident)
        pl.BlockSpec((n_tiles, g, tm), lambda p, i: (0, 0, 0)),  # mask tiles (resident)
    ] + [full(a) for a in inputs[3:]]

    grid_spec = pltpu.PrefetchScalarGridSpec(
        num_scalar_prefetch=0,
        grid=(2, n_tiles),                                     # (phase, row tile)
        in_specs=in_specs,
        out_specs=pl.BlockSpec((g, nclass), lambda p, i: (0, 0)),
        scratch_shapes=[
            pltpu.VMEM((n_pad, _FP), jnp.bfloat16),            # lane-dense H @ W2
            pltpu.VMEM((g, nhid), jnp.float32),                # pool-1 running max
            pltpu.VMEM((g, nhid), jnp.float32),                # pool-1 running sum
            pltpu.VMEM((g, _FP), jnp.float32),                 # pool-2 running max
            pltpu.VMEM((g, _FP), jnp.float32),                 # pool-2 running sum
        ],
    )

    flops = int(
        2 * n_pad * n_pad * (nhid + _FP)                       # A@XW1 and A@(H@W2)
        + 2 * n_pad * nhid * _FP                               # H@W2
        + 2 * g * n_pad * (nhid + _FP)                         # mean-pool matmuls
        + 2 * g * (in_dim * mid + mid * last + last * nclass))
    bytes_accessed = int(
        adj.size * 2 * (1 if a_resident else 2)
        + xw1.size * 2 + mask3.size * 2
        + sum(int(a.size) * a.dtype.itemsize for a in inputs[3:])
        + g * nclass * 4)
    cost = pl.CostEstimate(flops=flops, transcendentals=int(g * nclass),
                           bytes_accessed=bytes_accessed)

    kernel = functools.partial(_fused_gcn_kernel, g, tm, outfeat, a_resident)
    return pl.pallas_call(
        kernel,
        out_shape=jax.ShapeDtypeStruct((g, nclass), jnp.float32),
        grid_spec=grid_spec,
        compiler_params=pltpu.CompilerParams(
            # Accumulators / hw2 scratch carried across both grid axes -> sequential.
            # TODO(synk): v7x dual-TC split of the row-tile axis via core_map.
            dimension_semantics=("arbitrary", "arbitrary"),
            vmem_limit_bytes=_VMEM_LIMIT),
        cost_estimate=cost,
    )(*inputs)


# ---------------------------------------------------------------------------
# Parameter init (deterministic, mirrors module __init__ shapes; stored f32)
# ---------------------------------------------------------------------------
def xavier_uniform(key, fan_in, fan_out):
    bound = jnp.sqrt(6.0 / (fan_in + fan_out))
    # Stored already transposed to [in, out] for kernel-side X @ W.
    return jax.random.uniform(key, (fan_in, fan_out), jnp.float32, -bound, bound)


def init_params(key, infeat, nclass):
    nhid, outfeat = 64, 16
    mid, last = 256, 32
    in_dim = nhid * 2 + outfeat * 2  # 160
    ks = jax.random.split(key, 8)
    eps = 1e-5
    bn_scale = 1.0 / jnp.sqrt(1.0 + eps)  # eval-mode BN: running_var=1, weight=1
    return {
        "conv1_w": xavier_uniform(ks[0], infeat, nhid),
        "conv1_b": jnp.zeros((1, nhid), jnp.float32),
        "conv2_w": xavier_uniform(ks[1], nhid, outfeat),
        "conv2_b": jnp.zeros((1, outfeat), jnp.float32),
        "fc1_w": xavier_uniform(ks[2], in_dim, mid),
        "fc1_b": (1e-5 * jax.random.normal(ks[3], (1, mid))).astype(jnp.float32),
        "fc2_w": xavier_uniform(ks[4], mid, last),
        "fc2_b": (1e-5 * jax.random.normal(ks[5], (1, last))).astype(jnp.float32),
        "bn0_scale": jnp.full((1, in_dim), bn_scale, jnp.float32),
        "bn0_shift": jnp.zeros((1, in_dim), jnp.float32),
        "bn1_scale": jnp.full((1, mid), bn_scale, jnp.float32),
        "bn1_shift": jnp.zeros((1, mid), jnp.float32),
        "cls_w": xavier_uniform(ks[6], last, nclass),
        "cls_b": (1e-5 * jax.random.normal(ks[7], (1, nclass))).astype(jnp.float32),
    }


# ---------------------------------------------------------------------------
# Pure-JAX f32 reference (for correctness check of the fused bf16 kernel)
# ---------------------------------------------------------------------------
def reference_forward(params, x, edge_index, batch, edge_attr, num_graphs):
    ea = jnp.where(jnp.isnan(edge_attr), 0.0, edge_attr).astype(jnp.float32)
    n = x.shape[0]
    adj = jnp.zeros((n, n), jnp.float32).at[edge_index[1], edge_index[0]].add(ea)
    mask = (batch[None, :] == jnp.arange(num_graphs)[:, None]).astype(jnp.float32)
    cnt = mask.sum(1, keepdims=True)

    def pool(h):
        gmax = jnp.max(jnp.where(mask[:, :, None] > 0, h[None], -jnp.inf), axis=1)
        gmean = (mask @ h) / cnt
        return jnp.concatenate([gmax, gmean], axis=1)

    h = jax.nn.relu(adj @ (x @ params["conv1_w"]) + params["conv1_b"])
    x1 = pool(h)
    h2 = adj @ (h @ params["conv2_w"]) + params["conv2_b"]
    x2 = pool(h2)
    xf = jnp.concatenate([x1, x2], axis=1)
    xf = xf * params["bn0_scale"] + params["bn0_shift"]
    hh = jax.nn.relu(xf @ params["fc1_w"] + params["fc1_b"])
    hh = hh * params["bn1_scale"] + params["bn1_shift"]
    hh = jax.nn.relu(hh @ params["fc2_w"] + params["fc2_b"])
    logits = hh @ params["cls_w"] + params["cls_b"]
    return jax.nn.log_softmax(logits, axis=1)


# ---------------------------------------------------------------------------
if __name__ == "__main__":
    key = jax.random.PRNGKey(0)
    k_param, k_x, k_e1, k_e2, k_w = jax.random.split(key, 5)

    infeat = 8
    nclass = 3
    num_graphs = 2
    nodes_per_graph = 8
    n = num_graphs * nodes_per_graph          # 16 nodes total

    params = init_params(k_param, infeat, nclass)

    # Node features [N, infeat]
    x = jax.random.normal(k_x, (n, infeat), jnp.float32)

    # Edges: 20 random edges inside each graph
    e_per = 20
    src0 = jax.random.randint(k_e1, (e_per,), 0, nodes_per_graph)
    dst0 = jax.random.randint(k_e2, (e_per,), 0, nodes_per_graph)
    src = jnp.concatenate([src0, src0 + nodes_per_graph])
    dst = jnp.concatenate([dst0, dst0 + nodes_per_graph])
    edge_index = jnp.stack([src, dst], axis=0).astype(jnp.int32)   # [2, E]

    edge_attr = jax.random.normal(k_w, (2 * e_per,), jnp.float32)
    # inject NaNs to exercise the isnan -> 0 path
    edge_attr = edge_attr.at[3].set(jnp.nan).at[25].set(jnp.nan)

    batch = jnp.concatenate([
        jnp.zeros((nodes_per_graph,), jnp.int32),
        jnp.ones((nodes_per_graph,), jnp.int32),
    ])

    out = my_gcn_forward(params, x, edge_index, batch, edge_attr,
                         num_graphs=num_graphs, nclass=nclass)
    out = jax.block_until_ready(out)

    assert out.shape == (num_graphs, nclass)
    assert bool(jnp.all(jnp.isfinite(out)))
    # log_softmax rows should sum (in prob space) to ~1
    assert bool(jnp.allclose(jnp.sum(jnp.exp(out), axis=1), 1.0, atol=1e-5))
    # bf16-matmul kernel vs f32 reference (generous tolerance for bf16 rounding)
    ref = reference_forward(params, x, edge_index, batch, edge_attr, num_graphs)
    assert bool(jnp.max(jnp.abs(out - ref)) < 0.1), float(jnp.max(jnp.abs(out - ref)))
    print("KERNEL_OK")
</pallas_src>

<mosaic_0001>
module attributes {stable_mosaic.version = 11 : i64} {
  func.func @_fused_gcn_kernel(%arg0: i32, %arg1: i32, %arg2: memref<128x128xbf16, #tpu.memory_space<vmem>>, %arg3: memref<128x64xbf16, #tpu.memory_space<vmem>>, %arg4: memref<1x2x128xbf16, #tpu.memory_space<vmem>>, %arg5: memref<2x1xf32, #tpu.memory_space<vmem>>, %arg6: memref<1x64xf32, #tpu.memory_space<vmem>>, %arg7: memref<64x128xbf16, #tpu.memory_space<vmem>>, %arg8: memref<1x128xf32, #tpu.memory_space<vmem>>, %arg9: memref<1x160xf32, #tpu.memory_space<vmem>>, %arg10: memref<1x160xf32, #tpu.memory_space<vmem>>, %arg11: memref<160x256xbf16, #tpu.memory_space<vmem>>, %arg12: memref<1x256xf32, #tpu.memory_space<vmem>>, %arg13: memref<1x256xf32, #tpu.memory_space<vmem>>, %arg14: memref<1x256xf32, #tpu.memory_space<vmem>>, %arg15: memref<256x32xbf16, #tpu.memory_space<vmem>>, %arg16: memref<1x32xf32, #tpu.memory_space<vmem>>, %arg17: memref<32x3xbf16, #tpu.memory_space<vmem>>, %arg18: memref<1x3xf32, #tpu.memory_space<vmem>>, %arg19: memref<2x3xf32, #tpu.memory_space<vmem>>, %arg20: memref<128x128xbf16, #tpu.memory_space<vmem>>, %arg21: memref<2x64xf32, #tpu.memory_space<vmem>>, %arg22: memref<2x64xf32, #tpu.memory_space<vmem>>, %arg23: memref<2x128xf32, #tpu.memory_space<vmem>>, %arg24: memref<2x128xf32, #tpu.memory_space<vmem>>) attributes {dimension_semantics = [#tpu.dimension_semantics<arbitrary>, #tpu.dimension_semantics<arbitrary>], iteration_bounds = array<i64: 2, 1>, scalar_prefetch = 0 : i64, scratch_operands = 5 : i64, tpu.core_type = #tpu.core_type<tc>, window_params = [{pipeline_mode = #tpu.pipeline_mode<synchronous>, transform_indices = @transform_0, window_bounds = array<i64: 128, 128>}, {pipeline_mode = #tpu.pipeline_mode<synchronous>, transform_indices = @transform_1, window_bounds = array<i64: 128, 64>}, {pipeline_mode = #tpu.pipeline_mode<synchronous>, transform_indices = @transform_2, window_bounds = array<i64: 1, 2, 128>}, {pipeline_mode = #tpu.pipeline_mode<synchronous>, transform_indices = @transform_3, window_bounds = array<i64: 2, 1>}, {pipeline_mode = #tpu.pipeline_mode<synchronous>, transform_indices = @transform_4, window_bounds = array<i64: 1, 64>}, {pipeline_mode = #tpu.pipeline_mode<synchronous>, transform_indices = @transform_5, window_bounds = array<i64: 64, 128>}, {pipeline_mode = #tpu.pipeline_mode<synchronous>, transform_indices = @transform_6, window_bounds = array<i64: 1, 128>}, {pipeline_mode = #tpu.pipeline_mode<synchronous>, transform_indices = @transform_7, window_bounds = array<i64: 1, 160>}, {pipeline_mode = #tpu.pipeline_mode<synchronous>, transform_indices = @transform_8, window_bounds = array<i64: 1, 160>}, {pipeline_mode = #tpu.pipeline_mode<synchronous>, transform_indices = @transform_9, window_bounds = array<i64: 160, 256>}, {pipeline_mode = #tpu.pipeline_mode<synchronous>, transform_indices = @transform_10, window_bounds = array<i64: 1, 256>}, {pipeline_mode = #tpu.pipeline_mode<synchronous>, transform_indices = @transform_11, window_bounds = array<i64: 1, 256>}, {pipeline_mode = #tpu.pipeline_mode<synchronous>, transform_indices = @transform_12, window_bounds = array<i64: 1, 256>}, {pipeline_mode = #tpu.pipeline_mode<synchronous>, transform_indices = @transform_13, window_bounds = array<i64: 256, 32>}, {pipeline_mode = #tpu.pipeline_mode<synchronous>, transform_indices = @transform_14, window_bounds = array<i64: 1, 32>}, {pipeline_mode = #tpu.pipeline_mode<synchronous>, transform_indices = @transform_15, window_bounds = array<i64: 32, 3>}, {pipeline_mode = #tpu.pipeline_mode<synchronous>, transform_indices = @transform_16, window_bounds = array<i64: 1, 3>}, {pipeline_mode = #tpu.pipeline_mode<synchronous>, transform_indices = @transform_17, window_bounds = array<i64: 2, 3>}]} {
    %c128_i32 = arith.constant 128 : i32
    %0 = arith.muli %arg1, %c128_i32 : i32
    %1 = tpu.assume_multiple %0, 128 : i32
    %2 = arith.index_cast %arg1 : i32 to index
    %c0 = arith.constant 0 : index
    %c0_0 = arith.constant 0 : index
    %3 = vector.load %arg4[%2, %c0, %c0_0] : memref<1x2x128xbf16, #tpu.memory_space<vmem>>, vector<1x2x128xbf16>
    %4 = vector.shape_cast %3 : vector<1x2x128xbf16> to vector<2x128xbf16>
    %c0_i32 = arith.constant 0 : i32
    %5 = arith.cmpi eq, %arg0, %c0_i32 : i32
    %6 = arith.extui %5 : i1 to i32
    %c0_i32_1 = arith.constant 0 : i32
    %7 = arith.cmpi ne, %6, %c0_i32_1 : i32
    scf.if %7 {
      %c0_i32_3 = arith.constant 0 : i32
      %11 = arith.cmpi eq, %arg1, %c0_i32_3 : i32
      %12 = arith.extui %11 : i1 to i32
      %c0_i32_4 = arith.constant 0 : i32
      %13 = arith.cmpi ne, %12, %c0_i32_4 : i32
      scf.if %13 {
        %cst_33 = arith.constant -1.000000e+30 : f32
        %61 = vector.broadcast %cst_33 : f32 to vector<2x64xf32>
        %c0_34 = arith.constant 0 : index
        %c0_35 = arith.constant 0 : index
        %62 = vector.load %arg21[%c0_34, %c0_35] : memref<2x64xf32, #tpu.memory_space<vmem>>, vector<2x64xf32>
        tpu.vector_store %arg21[%c0_34, %c0_35], %61 {strides = array<i32>} : memref<2x64xf32, #tpu.memory_space<vmem>>, vector<2x64xf32>,
        %cst_36 = arith.constant 0.000000e+00 : f32
        %63 = vector.broadcast %cst_36 : f32 to vector<2x64xf32>
        %c0_37 = arith.constant 0 : index
        %c0_38 = arith.constant 0 : index
        %64 = vector.load %arg22[%c0_37, %c0_38] : memref<2x64xf32, #tpu.memory_space<vmem>>, vector<2x64xf32>
        tpu.vector_store %arg22[%c0_37, %c0_38], %63 {strides = array<i32>} : memref<2x64xf32, #tpu.memory_space<vmem>>, vector<2x64xf32>,
      } else {
      }
      %14 = arith.index_cast %1 : i32 to index
      %c0_5 = arith.constant 0 : index
      %15 = vector.load %arg2[%14, %c0_5] : memref<128x128xbf16, #tpu.memory_space<vmem>>, vector<128x128xbf16>
      %c0_6 = arith.constant 0 : index
      %c0_7 = arith.constant 0 : index
      %16 = vector.load %arg3[%c0_6, %c0_7] : memref<128x64xbf16, #tpu.memory_space<vmem>>, vector<128x64xbf16>
      %cst = arith.constant dense<0.000000e+00> : vector<128x64xf32>
      %17 = tpu.matmul %15, %16, %cst {dimension_numbers = #tpu.dot_dimension_numbers<[1], [0], [0], [1], [0, 0, 1, 1], [], []>} : vector<128x128xbf16>, vector<128x64xbf16>, vector<128x64xf32> -> vector<128x64xf32>
      %c0_8 = arith.constant 0 : index
      %c0_9 = arith.constant 0 : index
      %18 = vector.load %arg6[%c0_8, %c0_9] : memref<1x64xf32, #tpu.memory_space<vmem>>, vector<1x64xf32>
      %19 = vector.broadcast %18 : vector<1x64xf32> to vector<128x64xf32>
      %20 = arith.addf %17, %19 : vector<128x64xf32>
      %cst_10 = arith.constant 0.000000e+00 : f32
      %21 = vector.broadcast %cst_10 : f32 to vector<128x64xf32>
      %22 = arith.maximumf %20, %21 : vector<128x64xf32>
      %23 = arith.truncf %22 : vector<128x64xf32> to vector<128x64xbf16>
      %24 = vector.extract_strided_slice %4 {offsets = [0, 0], sizes = [1, 128], strides = [1, 1]} : vector<2x128xbf16> to vector<1x128xbf16>
      %25 = vector.shape_cast %24 : vector<1x128xbf16> to vector<128xbf16>
      %26 = vector.shape_cast %25 : vector<128xbf16> to vector<128x1xbf16>
      %cst_11 = arith.constant 0.000000e+00 : bf16
      %27 = vector.broadcast %cst_11 : bf16 to vector<128x1xbf16>
      %28 = arith.cmpf ogt, %26, %27 : vector<128x1xbf16>
      %cst_12 = arith.constant -1.000000e+30 : f32
      %29 = vector.shape_cast %28 : vector<128x1xi1> to vector<128x1xi1>
      %30 = vector.broadcast %29 : vector<128x1xi1> to vector<128x64xi1>
      %31 = vector.broadcast %cst_12 : f32 to vector<128x64xf32>
      %32 = arith.select %30, %22, %31 : vector<128x64xi1>, vector<128x64xf32>
      %cst_13 = arith.constant dense<0xFF800000> : vector<64xf32>
      %33 = vector.multi_reduction <maximumf>, %32, %cst_13 [0] : vector<128x64xf32> to vector<64xf32>
      %34 = vector.shape_cast %33 : vector<64xf32> to vector<1x64xf32>
      %c0_14 = arith.constant 0 : index
      %c0_15 = arith.constant 0 : index
      %35 = vector.load %arg21[%c0_14, %c0_15] : memref<2x64xf32, #tpu.memory_space<vmem>>, vector<1x64xf32>
      %36 = arith.maximumf %35, %34 : vector<1x64xf32>
      %c0_16 = arith.constant 0 : index
      %c0_17 = arith.constant 0 : index
      %37 = vector.load %arg21[%c0_16, %c0_17] : memref<2x64xf32, #tpu.memory_space<vmem>>, vector<1x64xf32>
      tpu.vector_store %arg21[%c0_16, %c0_17], %36 {strides = array<i32>} : memref<2x64xf32, #tpu.memory_space<vmem>>, vector<1x64xf32>,
      %38 = vector.extract_strided_slice %4 {offsets = [1, 0], sizes = [1, 128], strides = [1, 1]} : vector<2x128xbf16> to vector<1x128xbf16>
      %39 = vector.shape_cast %38 : vector<1x128xbf16> to vector<128xbf16>
      %40 = vector.shape_cast %39 : vector<128xbf16> to vector<128x1xbf16>
      %cst_18 = arith.constant 0.000000e+00 : bf16
      %41 = vector.broadcast %cst_18 : bf16 to vector<128x1xbf16>
      %42 = arith.cmpf ogt, %40, %41 : vector<128x1xbf16>
      %cst_19 = arith.constant -1.000000e+30 : f32
      %43 = vector.shape_cast %42 : vector<128x1xi1> to vector<128x1xi1>
      %44 = vector.broadcast %43 : vector<128x1xi1> to vector<128x64xi1>
      %45 = vector.broadcast %cst_19 : f32 to vector<128x64xf32>
      %46 = arith.select %44, %22, %45 : vector<128x64xi1>, vector<128x64xf32>
      %cst_20 = arith.constant dense<0xFF800000> : vector<64xf32>
      %47 = vector.multi_reduction <maximumf>, %46, %cst_20 [0] : vector<128x64xf32> to vector<64xf32>
      %48 = vector.shape_cast %47 : vector<64xf32> to vector<1x64xf32>
      %c1 = arith.constant 1 : index
      %c0_21 = arith.constant 0 : index
      %49 = vector.load %arg21[%c1, %c0_21] : memref<2x64xf32, #tpu.memory_space<vmem>>, vector<1x64xf32>
      %50 = arith.maximumf %49, %48 : vector<1x64xf32>
      %c1_22 = arith.constant 1 : index
      %c0_23 = arith.constant 0 : index
      %51 = vector.load %arg21[%c1_22, %c0_23] : memref<2x64xf32, #tpu.memory_space<vmem>>, vector<1x64xf32>
      tpu.vector_store %arg21[%c1_22, %c0_23], %50 {strides = array<i32>} : memref<2x64xf32, #tpu.memory_space<vmem>>, vector<1x64xf32>,
      %c0_24 = arith.constant 0 : index
      %c0_25 = arith.constant 0 : index
      %52 = vector.load %arg22[%c0_24, %c0_25] : memref<2x64xf32, #tpu.memory_space<vmem>>, vector<2x64xf32>
      %cst_26 = arith.constant dense<0.000000e+00> : vector<2x64xf32>
      %53 = tpu.matmul %4, %23, %cst_26 {dimension_numbers = #tpu.dot_dimension_numbers<[1], [0], [0], [1], [0, 0, 1, 1], [], []>} : vector<2x128xbf16>, vector<128x64xbf16>, vector<2x64xf32> -> vector<2x64xf32>
      %54 = arith.addf %52, %53 : vector<2x64xf32>
      %c0_27 = arith.constant 0 : index
      %c0_28 = arith.constant 0 : index
      %55 = vector.load %arg22[%c0_27, %c0_28] : memref<2x64xf32, #tpu.memory_space<vmem>>, vector<2x64xf32>
      tpu.vector_store %arg22[%c0_27, %c0_28], %54 {strides = array<i32>} : memref<2x64xf32, #tpu.memory_space<vmem>>, vector<2x64xf32>,
      %c0_29 = arith.constant 0 : index
      %c0_30 = arith.constant 0 : index
      %56 = vector.load %arg7[%c0_29, %c0_30] : memref<64x128xbf16, #tpu.memory_space<vmem>>, vector<64x128xbf16>
      %cst_31 = arith.constant dense<0.000000e+00> : vector<128x128xf32>
      %57 = tpu.matmul %23, %56, %cst_31 {dimension_numbers = #tpu.dot_dimension_numbers<[1], [0], [0], [1], [0, 0, 1, 1], [], []>} : vector<128x64xbf16>, vector<64x128xbf16>, vector<128x128xf32> -> vector<128x128xf32>
      %58 = arith.truncf %57 : vector<128x128xf32> to vector<128x128xbf16>
      %59 = arith.index_cast %1 : i32 to index
      %c0_32 = arith.constant 0 : index
      %60 = vector.load %arg20[%59, %c0_32] : memref<128x128xbf16, #tpu.memory_space<vmem>>, vector<128x128xbf16>
      tpu.vector_store %arg20[%59, %c0_32], %58 {strides = array<i32>} : memref<128x128xbf16, #tpu.memory_space<vmem>>, vector<128x128xbf16>,
    } else {
    }
    %c1_i32 = arith.constant 1 : i32
    %8 = arith.cmpi eq, %arg0, %c1_i32 : i32
    %9 = arith.extui %8 : i1 to i32
    %c0_i32_2 = arith.constant 0 : i32
    %10 = arith.cmpi ne, %9, %c0_i32_2 : i32
    scf.if %10 {
      %c0_i32_3 = arith.constant 0 : i32
      %11 = arith.cmpi eq, %arg1, %c0_i32_3 : i32
      %12 = arith.extui %11 : i1 to i32
      %c0_i32_4 = arith.constant 0 : i32
      %13 = arith.cmpi ne, %12, %c0_i32_4 : i32
      scf.if %13 {
        %cst_30 = arith.constant -1.000000e+30 : f32
        %57 = vector.broadcast %cst_30 : f32 to vector<2x128xf32>
        %c0_31 = arith.constant 0 : index
        %c0_32 = arith.constant 0 : index
        %58 = vector.load %arg23[%c0_31, %c0_32] : memref<2x128xf32, #tpu.memory_space<vmem>>, vector<2x128xf32>
        tpu.vector_store %arg23[%c0_31, %c0_32], %57 {strides = array<i32>} : memref<2x128xf32, #tpu.memory_space<vmem>>, vector<2x128xf32>,
        %cst_33 = arith.constant 0.000000e+00 : f32
        %59 = vector.broadcast %cst_33 : f32 to vector<2x128xf32>
        %c0_34 = arith.constant 0 : index
        %c0_35 = arith.constant 0 : index
        %60 = vector.load %arg24[%c0_34, %c0_35] : memref<2x128xf32, #tpu.memory_space<vmem>>, vector<2x128xf32>
        tpu.vector_store %arg24[%c0_34, %c0_35], %59 {strides = array<i32>} : memref<2x128xf32, #tpu.memory_space<vmem>>, vector<2x128xf32>,
      } else {
      }
      %14 = arith.index_cast %1 : i32 to index
      %c0_5 = arith.constant 0 : index
      %15 = vector.load %arg2[%14, %c0_5] : memref<128x128xbf16, #tpu.memory_space<vmem>>, vector<128x128xbf16>
      %c0_6 = arith.constant 0 : index
      %c0_7 = arith.constant 0 : index
      %16 = vector.load %arg20[%c0_6, %c0_7] : memref<128x128xbf16, #tpu.memory_space<vmem>>, vector<128x128xbf16>
      %cst = arith.constant dense<0.000000e+00> : vector<128x128xf32>
      %17 = tpu.matmul %15, %16, %cst {dimension_numbers = #tpu.dot_dimension_numbers<[1], [0], [0], [1], [0, 0, 1, 1], [], []>} : vector<128x128xbf16>, vector<128x128xbf16>, vector<128x128xf32> -> vector<128x128xf32>
      %c0_8 = arith.constant 0 : index
      %c0_9 = arith.constant 0 : index
      %18 = vector.load %arg8[%c0_8, %c0_9] : memref<1x128xf32, #tpu.memory_space<vmem>>, vector<1x128xf32>
      %19 = vector.broadcast %18 : vector<1x128xf32> to vector<128x128xf32>
      %20 = arith.addf %17, %19 : vector<128x128xf32>
      %21 = vector.extract_strided_slice %4 {offsets = [0, 0], sizes = [1, 128], strides = [1, 1]} : vector<2x128xbf16> to vector<1x128xbf16>
      %22 = vector.shape_cast %21 : vector<1x128xbf16> to vector<128xbf16>
      %23 = vector.shape_cast %22 : vector<128xbf16> to vector<128x1xbf16>
      %cst_10 = arith.constant 0.000000e+00 : bf16
      %24 = vector.broadcast %cst_10 : bf16 to vector<128x1xbf16>
      %25 = arith.cmpf ogt, %23, %24 : vector<128x1xbf16>
      %cst_11 = arith.constant -1.000000e+30 : f32
      %26 = vector.shape_cast %25 : vector<128x1xi1> to vector<128x1xi1>
      %27 = vector.broadcast %26 : vector<128x1xi1> to vector<128x128xi1>
      %28 = vector.broadcast %cst_11 : f32 to vector<128x128xf32>
      %29 = arith.select %27, %20, %28 : vector<128x128xi1>, vector<128x128xf32>
      %cst_12 = arith.constant dense<0xFF800000> : vector<128xf32>
      %30 = vector.multi_reduction <maximumf>, %29, %cst_12 [0] : vector<128x128xf32> to vector<128xf32>
      %31 = vector.shape_cast %30 : vector<128xf32> to vector<1x128xf32>
      %c0_13 = arith.constant 0 : index
      %c0_14 = arith.constant 0 : index
      %32 = vector.load %arg23[%c0_13, %c0_14] : memref<2x128xf32, #tpu.memory_space<vmem>>, vector<1x128xf32>
      %33 = arith.maximumf %32, %31 : vector<1x128xf32>
      %c0_15 = arith.constant 0 : index
      %c0_16 = arith.constant 0 : index
      %34 = vector.load %arg23[%c0_15, %c0_16] : memref<2x128xf32, #tpu.memory_space<vmem>>, vector<1x128xf32>
      tpu.vector_store %arg23[%c0_15, %c0_16], %33 {strides = array<i32>} : memref<2x128xf32, #tpu.memory_space<vmem>>, vector<1x128xf32>,
      %35 = vector.extract_strided_slice %4 {offsets = [1, 0], sizes = [1, 128], strides = [1, 1]} : vector<2x128xbf16> to vector<1x128xbf16>
      %36 = vector.shape_cast %35 : vector<1x128xbf16> to vector<128xbf16>
      %37 = vector.shape_cast %36 : vector<128xbf16> to vector<128x1xbf16>
      %cst_17 = arith.constant 0.000000e+00 : bf16
      %38 = vector.broadcast %cst_17 : bf16 to vector<128x1xbf16>
      %39 = arith.cmpf ogt, %37, %38 : vector<128x1xbf16>
      %cst_18 = arith.constant -1.000000e+30 : f32
      %40 = vector.shape_cast %39 : vector<128x1xi1> to vector<128x1xi1>
      %41 = vector.broadcast %40 : vector<128x1xi1> to vector<128x128xi1>
      %42 = vector.broadcast %cst_18 : f32 to vector<128x128xf32>
      %43 = arith.select %41, %20, %42 : vector<128x128xi1>, vector<128x128xf32>
      %cst_19 = arith.constant dense<0xFF800000> : vector<128xf32>
      %44 = vector.multi_reduction <maximumf>, %43, %cst_19 [0] : vector<128x128xf32> to vector<128xf32>
      %45 = vector.shape_cast %44 : vector<128xf32> to vector<1x128xf32>
      %c1 = arith.constant 1 : index
      %c0_20 = arith.constant 0 : index
      %46 = vector.load %arg23[%c1, %c0_20] : memref<2x128xf32, #tpu.memory_space<vmem>>, vector<1x128xf32>
      %47 = arith.maximumf %46, %45 : vector<1x128xf32>
      %c1_21 = arith.constant 1 : index
      %c0_22 = arith.constant 0 : index
      %48 = vector.load %arg23[%c1_21, %c0_22] : memref<2x128xf32, #tpu.memory_space<vmem>>, vector<1x128xf32>
      tpu.vector_store %arg23[%c1_21, %c0_22], %47 {strides = array<i32>} : memref<2x128xf32, #tpu.memory_space<vmem>>, vector<1x128xf32>,
      %c0_23 = arith.constant 0 : index
      %c0_24 = arith.constant 0 : index
      %49 = vector.load %arg24[%c0_23, %c0_24] : memref<2x128xf32, #tpu.memory_space<vmem>>, vector<2x128xf32>
      %50 = arith.truncf %20 : vector<128x128xf32> to vector<128x128xbf16>
      %cst_25 = arith.constant dense<0.000000e+00> : vector<2x128xf32>
      %51 = tpu.matmul %4, %50, %cst_25 {dimension_numbers = #tpu.dot_dimension_numbers<[1], [0], [0], [1], [0, 0, 1, 1], [], []>} : vector<2x128xbf16>, vector<128x128xbf16>, vector<2x128xf32> -> vector<2x128xf32>
      %52 = arith.addf %49, %51 : vector<2x128xf32>
      %c0_26 = arith.constant 0 : index
      %c0_27 = arith.constant 0 : index
      %53 = vector.load %arg24[%c0_26, %c0_27] : memref<2x128xf32, #tpu.memory_space<vmem>>, vector<2x128xf32>
      tpu.vector_store %arg24[%c0_26, %c0_27], %52 {strides = array<i32>} : memref<2x128xf32, #tpu.memory_space<vmem>>, vector<2x128xf32>,
      %c0_i32_28 = arith.constant 0 : i32
      %54 = arith.cmpi eq, %arg1, %c0_i32_28 : i32
      %55 = arith.extui %54 : i1 to i32
      %c0_i32_29 = arith.constant 0 : i32
      %56 = arith.cmpi ne, %55, %c0_i32_29 : i32
      scf.if %56 {
        %c0_30 = arith.constant 0 : index
        %c0_31 = arith.constant 0 : index
        %57 = vector.load %arg5[%c0_30, %c0_31] : memref<2x1xf32, #tpu.memory_space<vmem>>, vector<2x1xf32>
        %c0_32 = arith.constant 0 : index
        %c0_33 = arith.constant 0 : index
        %58 = vector.load %arg21[%c0_32, %c0_33] : memref<2x64xf32, #tpu.memory_space<vmem>>, vector<2x64xf32>
        %c0_34 = arith.constant 0 : index
        %c0_35 = arith.constant 0 : index
        %59 = vector.load %arg22[%c0_34, %c0_35] : memref<2x64xf32, #tpu.memory_space<vmem>>, vector<2x64xf32>
        %60 = vector.broadcast %57 : vector<2x1xf32> to vector<2x64xf32>
        %61 = arith.mulf %59, %60 : vector<2x64xf32>
        %62 = tpu.concatenate %58, %61 in 1 : vector<2x64xf32>, vector<2x64xf32> -> vector<2x128xf32>
        %c0_36 = arith.constant 0 : index
        %c0_37 = arith.constant 0 : index
        %63 = vector.load %arg23[%c0_36, %c0_37] : memref<2x128xf32, #tpu.memory_space<vmem>>, vector<2x16xf32>
        %c0_38 = arith.constant 0 : index
        %c0_39 = arith.constant 0 : index
        %64 = vector.load %arg24[%c0_38, %c0_39] : memref<2x128xf32, #tpu.memory_space<vmem>>, vector<2x16xf32>
        %65 = vector.broadcast %57 : vector<2x1xf32> to vector<2x16xf32>
        %66 = arith.mulf %64, %65 : vector<2x16xf32>
        %67 = tpu.concatenate %63, %66 in 1 : vector<2x16xf32>, vector<2x16xf32> -> vector<2x32xf32>
        %68 = tpu.concatenate %62, %67 in 1 : vector<2x128xf32>, vector<2x32xf32> -> vector<2x160xf32>
        %c0_40 = arith.constant 0 : index
        %c0_41 = arith.constant 0 : index
        %69 = vector.load %arg9[%c0_40, %c0_41] : memref<1x160xf32, #tpu.memory_space<vmem>>, vector<1x160xf32>
        %70 = vector.broadcast %69 : vector<1x160xf32> to vector<2x160xf32>
        %71 = arith.mulf %68, %70 : vector<2x160xf32>
        %c0_42 = arith.constant 0 : index
        %c0_43 = arith.constant 0 : index
        %72 = vector.load %arg10[%c0_42, %c0_43] : memref<1x160xf32, #tpu.memory_space<vmem>>, vector<1x160xf32>
        %73 = vector.broadcast %72 : vector<1x160xf32> to vector<2x160xf32>
        %74 = arith.addf %71, %73 : vector<2x160xf32>
        %75 = arith.truncf %74 : vector<2x160xf32> to vector<2x160xbf16>
        %c0_44 = arith.constant 0 : index
        %c0_45 = arith.constant 0 : index
        %76 = vector.load %arg11[%c0_44, %c0_45] : memref<160x256xbf16, #tpu.memory_space<vmem>>, vector<160x256xbf16>
        %cst_46 = arith.constant dense<0.000000e+00> : vector<2x256xf32>
        %77 = tpu.matmul %75, %76, %cst_46 {dimension_numbers = #tpu.dot_dimension_numbers<[1], [0], [0], [1], [0, 0, 1, 1], [], []>} : vector<2x160xbf16>, vector<160x256xbf16>, vector<2x256xf32> -> vector<2x256xf32>
        %c0_47 = arith.constant 0 : index
        %c0_48 = arith.constant 0 : index
        %78 = vector.load %arg12[%c0_47, %c0_48] : memref<1x256xf32, #tpu.memory_space<vmem>>, vector<1x256xf32>
        %79 = vector.broadcast %78 : vector<1x256xf32> to vector<2x256xf32>
        %80 = arith.addf %77, %79 : vector<2x256xf32>
        %cst_49 = arith.constant 0.000000e+00 : f32
        %81 = vector.broadcast %cst_49 : f32 to vector<2x256xf32>
        %82 = arith.maximumf %80, %81 : vector<2x256xf32>
        %c0_50 = arith.constant 0 : index
        %c0_51 = arith.constant 0 : index
        %83 = vector.load %arg13[%c0_50, %c0_51] : memref<1x256xf32, #tpu.memory_space<vmem>>, vector<1x256xf32>
        %84 = vector.broadcast %83 : vector<1x256xf32> to vector<2x256xf32>
        %85 = arith.mulf %82, %84 : vector<2x256xf32>
        %c0_52 = arith.constant 0 : index
        %c0_53 = arith.constant 0 : index
        %86 = vector.load %arg14[%c0_52, %c0_53] : memref<1x256xf32, #tpu.memory_space<vmem>>, vector<1x256xf32>
        %87 = vector.broadcast %86 : vector<1x256xf32> to vector<2x256xf32>
        %88 = arith.addf %85, %87 : vector<2x256xf32>
        %89 = arith.truncf %88 : vector<2x256xf32> to vector<2x256xbf16>
        %c0_54 = arith.constant 0 : index
        %c0_55 = arith.constant 0 : index
        %90 = vector.load %arg15[%c0_54, %c0_55] : memref<256x32xbf16, #tpu.memory_space<vmem>>, vector<256x32xbf16>
        %cst_56 = arith.constant dense<0.000000e+00> : vector<2x32xf32>
        %91 = tpu.matmul %89, %90, %cst_56 {dimension_numbers = #tpu.dot_dimension_numbers<[1], [0], [0], [1], [0, 0, 1, 1], [], []>} : vector<2x256xbf16>, vector<256x32xbf16>, vector<2x32xf32> -> vector<2x32xf32>
        %c0_57 = arith.constant 0 : index
        %c0_58 = arith.constant 0 : index
        %92 = vector.load %arg16[%c0_57, %c0_58] : memref<1x32xf32, #tpu.memory_space<vmem>>, vector<1x32xf32>
        %93 = vector.broadcast %92 : vector<1x32xf32> to vector<2x32xf32>
        %94 = arith.addf %91, %93 : vector<2x32xf32>
        %cst_59 = arith.constant 0.000000e+00 : f32
        %95 = vector.broadcast %cst_59 : f32 to vector<2x32xf32>
        %96 = arith.maximumf %94, %95 : vector<2x32xf32>
        %97 = arith.truncf %96 : vector<2x32xf32> to vector<2x32xbf16>
        %c0_60 = arith.constant 0 : index
        %c0_61 = arith.constant 0 : index
        %98 = vector.load %arg17[%c0_60, %c0_61] : memref<32x3xbf16, #tpu.memory_space<vmem>>, vector<32x3xbf16>
        %cst_62 = arith.constant dense<0.000000e+00> : vector<2x3xf32>
        %99 = tpu.matmul %97, %98, %cst_62 {dimension_numbers = #tpu.dot_dimension_numbers<[1], [0], [0], [1], [0, 0, 1, 1], [], []>} : vector<2x32xbf16>, vector<32x3xbf16>, vector<2x3xf32> -> vector<2x3xf32>
        %c0_63 = arith.constant 0 : index
        %c0_64 = arith.constant 0 : index
        %100 = vector.load %arg18[%c0_63, %c0_64] : memref<1x3xf32, #tpu.memory_space<vmem>>, vector<1x3xf32>
        %101 = vector.broadcast %100 : vector<1x3xf32> to vector<2x3xf32>
        %102 = arith.addf %99, %101 : vector<2x3xf32>
        %cst_65 = arith.constant dense<0xFF800000> : vector<2xf32>
        %103 = vector.multi_reduction <maximumf>, %102, %cst_65 [1] : vector<2x3xf32> to vector<2xf32>
        %104 = vector.shape_cast %103 : vector<2xf32> to vector<2x1xf32>
        %105 = vector.broadcast %104 : vector<2x1xf32> to vector<2x3xf32>
        %106 = arith.subf %102, %105 : vector<2x3xf32>
        %107 = math.exp %106 : vector<2x3xf32>
        %cst_66 = arith.constant dense<0.000000e+00> : vector<2xf32>
        %108 = vector.multi_reduction <add>, %107, %cst_66 [1] : vector<2x3xf32> to vector<2xf32>
        %109 = vector.shape_cast %108 : vector<2xf32> to vector<2x1xf32>
        %110 = math.log %109 : vector<2x1xf32>
        %111 = vector.broadcast %110 : vector<2x1xf32> to vector<2x3xf32>
        %112 = arith.subf %106, %111 : vector<2x3xf32>
        %c0_67 = arith.constant 0 : index
        %c0_68 = arith.constant 0 : index
        %113 = vector.load %arg19[%c0_67, %c0_68] : memref<2x3xf32, #tpu.memory_space<vmem>>, vector<2x3xf32>
        tpu.vector_store %arg19[%c0_67, %c0_68], %112 {strides = array<i32>} : memref<2x3xf32, #tpu.memory_space<vmem>>, vector<2x3xf32>,
      } else {
      }
    } else {
    }
    return
  }
  func.func @transform_0(%arg0: i32, %arg1: i32) -> (i32, i32) {
    %c0_i32 = arith.constant 0 : i32
    %c0_i32_0 = arith.constant 0 : i32
    %c0_i32_1 = arith.constant 0 : i32
    return %c0_i32, %c0_i32_0 : i32, i32
  }
  func.func @transform_1(%arg0: i32, %arg1: i32) -> (i32, i32) {
    %c0_i32 = arith.constant 0 : i32
    %c0_i32_0 = arith.constant 0 : i32
    %c0_i32_1 = arith.constant 0 : i32
    return %c0_i32, %c0_i32_0 : i32, i32
  }
  func.func @transform_2(%arg0: i32, %arg1: i32) -> (i32, i32, i32) {
    %c0_i32 = arith.constant 0 : i32
    %c0_i32_0 = arith.constant 0 : i32
    %c0_i32_1 = arith.constant 0 : i32
    %c0_i32_2 = arith.constant 0 : i32
    return %c0_i32, %c0_i32_0, %c0_i32_1 : i32, i32, i32
  }
  func.func @transform_3(%arg0: i32, %arg1: i32) -> (i32, i32) {
    %c0_i32 = arith.constant 0 : i32
    %c0_i32_0 = arith.constant 0 : i32
    %c0_i32_1 = arith.constant 0 : i32
    return %c0_i32, %c0_i32_0 : i32, i32
  }
  func.func @transform_4(%arg0: i32, %arg1: i32) -> (i32, i32) {
    %c0_i32 = arith.constant 0 : i32
    %c0_i32_0 = arith.constant 0 : i32
    %c0_i32_1 = arith.constant 0 : i32
    return %c0_i32, %c0_i32_0 : i32, i32
  }
  func.func @transform_5(%arg0: i32, %arg1: i32) -> (i32, i32) {
    %c0_i32 = arith.constant 0 : i32
    %c0_i32_0 = arith.constant 0 : i32
    %c0_i32_1 = arith.constant 0 : i32
    return %c0_i32, %c0_i32_0 : i32, i32
  }
  func.func @transform_6(%arg0: i32, %arg1: i32) -> (i32, i32) {
    %c0_i32 = arith.constant 0 : i32
    %c0_i32_0 = arith.constant 0 : i32
    %c0_i32_1 = arith.constant 0 : i32
    return %c0_i32, %c0_i32_0 : i32, i32
  }
  func.func @transform_7(%arg0: i32, %arg1: i32) -> (i32, i32) {
    %c0_i32 = arith.constant 0 : i32
    %c0_i32_0 = arith.constant 0 : i32
    %c0_i32_1 = arith.constant 0 : i32
    return %c0_i32, %c0_i32_0 : i32, i32
  }
  func.func @transform_8(%arg0: i32, %arg1: i32) -> (i32, i32) {
    %c0_i32 = arith.constant 0 : i32
    %c0_i32_0 = arith.constant 0 : i32
    %c0_i32_1 = arith.constant 0 : i32
    return %c0_i32, %c0_i32_0 : i32, i32
  }
  func.func @transform_9(%arg0: i32, %arg1: i32) -> (i32, i32) {
    %c0_i32 = arith.constant 0 : i32
    %c0_i32_0 = arith.constant 0 : i32
    %c0_i32_1 = arith.constant 0 : i32
    return %c0_i32, %c0_i32_0 : i32, i32
  }
  func.func @transform_10(%arg0: i32, %arg1: i32) -> (i32, i32) {
    %c0_i32 = arith.constant 0 : i32
    %c0_i32_0 = arith.constant 0 : i32
    %c0_i32_1 = arith.constant 0 : i32
    return %c0_i32, %c0_i32_0 : i32, i32
  }
  func.func @transform_11(%arg0: i32, %arg1: i32) -> (i32, i32) {
    %c0_i32 = arith.constant 0 : i32
    %c0_i32_0 = arith.constant 0 : i32
    %c0_i32_1 = arith.constant 0 : i32
    return %c0_i32, %c0_i32_0 : i32, i32
  }
  func.func @transform_12(%arg0: i32, %arg1: i32) -> (i32, i32) {
    %c0_i32 = arith.constant 0 : i32
    %c0_i32_0 = arith.constant 0 : i32
    %c0_i32_1 = arith.constant 0 : i32
    return %c0_i32, %c0_i32_0 : i32, i32
  }
  func.func @transform_13(%arg0: i32, %arg1: i32) -> (i32, i32) {
    %c0_i32 = arith.constant 0 : i32
    %c0_i32_0 = arith.constant 0 : i32
    %c0_i32_1 = arith.constant 0 : i32
    return %c0_i32, %c0_i32_0 : i32, i32
  }
  func.func @transform_14(%arg0: i32, %arg1: i32) -> (i32, i32) {
    %c0_i32 = arith.constant 0 : i32
    %c0_i32_0 = arith.constant 0 : i32
    %c0_i32_1 = arith.constant 0 : i32
    return %c0_i32, %c0_i32_0 : i32, i32
  }
  func.func @transform_15(%arg0: i32, %arg1: i32) -> (i32, i32) {
    %c0_i32 = arith.constant 0 : i32
    %c0_i32_0 = arith.constant 0 : i32
    %c0_i32_1 = arith.constant 0 : i32
    return %c0_i32, %c0_i32_0 : i32, i32
  }
  func.func @transform_16(%arg0: i32, %arg1: i32) -> (i32, i32) {
    %c0_i32 = arith.constant 0 : i32
    %c0_i32_0 = arith.constant 0 : i32
    %c0_i32_1 = arith.constant 0 : i32
    return %c0_i32, %c0_i32_0 : i32, i32
  }
  func.func @transform_17(%arg0: i32, %arg1: i32) -> (i32, i32) {
    %c0_i32 = arith.constant 0 : i32
    %c0_i32_0 = arith.constant 0 : i32
    %c0_i32_1 = arith.constant 0 : i32
    return %c0_i32, %c0_i32_0 : i32, i32
  }
}

</mosaic_0001>

<bundles_post_ra>
// kernel: my_gcn_forward.1
= control target key start
LH: loop header
LB: loop body
LE: loop exit
PB: predicated region body
PF: predicated region fallthrough
CT: control target
= control target key end

     0   :  { %s5111_s0 = inlined_call_operand.vmem [shape: bf16[128,128], index: 0, kind: input, shape index: {}]   ;;  %s5112_s1 = inlined_call_operand.vmem [shape: bf16[128,64], index: 1, kind: input, shape index: {}]   ;;  %s5113_s2 = inlined_call_operand.vmem [shape: bf16[1,2,128], index: 2, kind: input, shape index: {}]   ;;  %s5114_s3 = inlined_call_operand.vmem [shape: f32[2,1], index: 3, kind: input, shape index: {}]   ;;  %s5115_s4 = inlined_call_operand.vmem [shape: f32[1,64], index: 4, kind: input, shape index: {}]   ;;  %s5116_s5 = inlined_call_operand.vmem [shape: bf16[64,128], index: 5, kind: input, shape index: {}]   ;;  %s5117_s6 = inlined_call_operand.vmem [shape: f32[1,128], index: 6, kind: input, shape index: {}]   ;;  %s5118_s7 = inlined_call_operand.vmem [shape: f32[1,160], index: 7, kind: input, shape index: {}]   ;;  %s5119_s8 = inlined_call_operand.vmem [shape: f32[1,160], index: 8, kind: input, shape index: {}]   ;;  %s5120_s9 = inlined_call_operand.vmem [shape: bf16[160,256], index: 9, kind: input, shape index: {}]   ;;  %s5121_s10 = inlined_call_operand.vmem [shape: f32[1,256], index: 10, kind: input, shape index: {}]   ;;  %s5122_s11 = inlined_call_operand.vmem [shape: f32[1,256], index: 11, kind: input, shape index: {}]   ;;  %s5123_s12 = inlined_call_operand.vmem [shape: f32[1,256], index: 12, kind: input, shape index: {}]   ;;  %s5124_s13 = inlined_call_operand.vmem [shape: bf16[256,32], index: 13, kind: input, shape index: {}]   ;;  %s5125_s14 = inlined_call_operand.vmem [shape: f32[1,32], index: 14, kind: input, shape index: {}]   ;;  %s5126_s15 = inlined_call_operand.vmem [shape: bf16[32,3], index: 15, kind: input, shape index: {}]   ;;  %s5127_s16 = inlined_call_operand.vmem [shape: f32[1,3], index: 16, kind: input, shape index: {}]   ;;  %s5128_s17 = inlined_call_operand.hbm [shape: f32[2,3], index: 17, kind: output, shape index: {}]  }
   0x1   :  { %5132 = sst [smem:[#allocation10_spill]] %s5111_s0 }
   0x2   :  { %5133 = sst [smem:[#allocation11_spill]] %s5112_s1 }
   0x3   :  { %5134 = sst [smem:[#allocation12_spill]] %s5113_s2 }
   0x4   :  { %22 = vsyncpa [#allocation8], 0  ;;  %s4080_s24 = smov 0   ;;  %s4082_s25 = smov 0  }
   0x5   :  { %s4084_s26 = smov 0  }
   0x6 LB: > { %s40_s28 = sadd.s32 1, %s3969_s25  ;;  %p3389_p1 = scmp.ge.s32.totalorder %s3973_s26, 1  ;;  %s3973_s26 = sphi %s4084_s26, %s28_s26   ;;  %s3969_s25 = sphi %s4082_s25, %s5200_s25   ;;  %s3965_s24 = sphi %s4080_s24, %s5199_s24  }
   0x7   : > { %p42_p0 = scmp.ge.s32.totalorder %s40_s28, 2  ;;  %p485_p2 = scmp.lt.s32.totalorder %s3973_s26, 3 }
   0x9   : > { %s5202_s28 = smov (%p42_p0, %s40_s28), 0  ;;  %p486_p3 = pnand %p3389_p1, %p485_p2 }
   0xa   : > { %s5135_s2 = sld [smem:[#allocation12_spill]] (!%p486_p3)  ;;  %p3390_p4 = scmp.ne.s32.totalorder (!%p486_p3), %s3965_s24, 0 }
   0xb   : > { %489 = sbr.rel (%p486_p3) target bundleno = 2070 (0x816), region = 88 }
  0x10   : > { %v4104_v0 = vld [vmem:[%s5135_s2] sm:$0x1]  ;;  %536 = sbr.rel (%p3390_p4) target bundleno = 512 (0x200), region = 92  ;;  %s5136_s19 = sld [smem:[#allocation11_spill]] (!%p3390_p4) }
  0x11   : > { %s5137_s18 = sld [smem:[#allocation10_spill]] (!%p3390_p4) }
  0x15   : > { %v807_v2 = vlaneseq  ;;  %v805_v4 = vpack.i.b16 %v4104_v0, %v4104_v0  ;;  %v1172_v6 = vshrl.u32 %v4104_v0, 16  ;;  %v3975_v7 = vmov 0   ;;  %v3849_v26 = vld [vmem:[%s5116_s5 + $0x18] sm:$0xff]   ;;  %v3850_v27 = vld [vmem:[%s5116_s5 + $0x10] sm:$0xff]   ;;  %v3851_v28 = vld [vmem:[%s5116_s5 + $0x8] sm:$0xff]  }
  0x16   : > { %v3833_v1 = vld [vmem:[%s5136_s19 + $0x38] sm:$0xff]   ;;  %v3834_v3 = vld [vmem:[%s5136_s19 + $0x30] sm:$0xff]   ;;  %3832 = vset.pattern.permute.xlu1 %v3975_v7  ;;  %3831 = vset.pattern.permute.xlu0 %v3975_v7  ;;  %v3835_v9 = vld [vmem:[%s5136_s19 + $0x28] sm:$0xff]   ;;  %v3976_v30 = vmov 839922192  }
  0x17   : > { %3650 = vmatprep.subr.bf16.mxu0 %v3833_v1  ;;  %v4115_v5 = vshrl.u32 %v807_v2, 7  ;;  %v3836_v11 = vld [vmem:[%s5136_s19 + $0x20] sm:$0xff]   ;;  %v1173_v12 = vpack.i.b16 %v1172_v6, %v1172_v6  ;;  %v3837_v15 = vld [vmem:[%s5136_s19 + $0x18] sm:$0xff]   ;;  %v3838_v16 = vld [vmem:[%s5136_s19 + $0x10] sm:$0xff]   ;;  %3702 = vmatprep.subr.bf16.mxu1 %v3849_v26  ;;  %v859_v31 = vunpack.c.l.s4 %v3976_v30  ;;  %v3977_v32 = vmov 1985246804  }
  0x18   : > { %3651 = vmatpush3.bf16.msra.mxu0 %v3833_v1  ;;  %v3841_v13 = vld [vmem:[%s5137_s18] sm:$0xff]   ;;  %v3839_v17 = vld [vmem:[%s5136_s19 + $0x8] sm:$0xff]   ;;  %v3843_v20 = vld [vmem:[%s5137_s18 + $0x10] sm:$0xff]   ;;  %3703 = vmatpush3.bf16.msra.mxu1 %v3849_v26  ;;  %v866_v33 = vunpack.c.l.s4 %v3977_v32 }
  0x19   : > { %3652 = vmatprep.subr.bf16.mxu0 %v3834_v3  ;;  %v809_v8 = vsub.s32 0, %v4115_v5  ;;  %3666 = vmatprep.mubr.bf16.mxu0 %v3841_v13  ;;  %v3840_v18 = vld [vmem:[%s5136_s19] sm:$0xff]   ;;  %v3842_v19 = vld [vmem:[%s5137_s18 + $0x8] sm:$0xff]   ;;  %v3844_v21 = vld [vmem:[%s5137_s18 + $0x18] sm:$0xff]   ;;  %v860_v34 = vunpack.c.0.s8 %v859_v31 }
  0x1a   : > { %v3845_v22 = vld [vmem:[%s5137_s18 + $0x20] sm:$0xff]   ;;  %v3846_v23 = vld [vmem:[%s5137_s18 + $0x28] sm:$0xff]   ;;  %v3847_v24 = vld [vmem:[%s5137_s18 + $0x30] sm:$0xff]   ;;  %3704 = vmatprep.subr.bf16.mxu1 %v3850_v27  ;;  %v867_v35 = vunpack.c.0.s8 %v866_v33 }
  0x1b   : > { %v810_v10 = vrot.slane %v805_v4, %v809_v8  ;;  %v1178_v14 = vrot.slane %v1173_v12, %v809_v8  ;;  %v3848_v25 = vld [vmem:[%s5137_s18 + $0x38] sm:$0xff]   ;;  %v3852_v29 = vld [vmem:[%s5116_s5] sm:$0xff]   ;;  %v4176_v36 = vsub.s32 %v860_v34, %v4115_v5 }
  0x1c   : > { %3653 = vmatpush3.bf16.msra.mxu0 %v3834_v3  ;;  %3705 = vmatpush3.bf16.msra.mxu1 %v3850_v27  ;;  %v4179_v37 = vsub.s32 %v867_v35, %v4115_v5 }
  0x1d   : > { %812 = vbcast.lane.c.b16.xlu0 %v810_v10, 256  ;;  %3654 = vmatprep.subr.bf16.mxu0 %v3835_v9 }
  0x1e   : > { %820 = vbcast.lane.c.b16.xlu1 %v810_v10, 288  ;;  %3706 = vmatprep.subr.bf16.mxu1 %v3851_v28 }
  0x20   : > { %3655 = vmatpush3.bf16.msra.mxu0 %v3835_v9  ;;  %3707 = vmatpush3.bf16.msra.mxu1 %v3851_v28 }
  0x21   : > { %816 = vbcast.lane.c.b16.xlu0 %v810_v10, 272  ;;  %3656 = vmatprep.subr.bf16.mxu0 %v3836_v11 }
  0x22   : > { %824 = vbcast.lane.c.b16.xlu1 %v810_v10, 304  ;;  %3708 = vmatprep.subr.bf16.mxu1 %v3852_v29 }
  0x24   : > { %3657 = vmatpush3.bf16.msra.mxu0 %v3836_v11  ;;  %3709 = vmatpush3.bf16.msra.mxu1 %v3852_v29 }
  0x25   : > { %1180 = vbcast.lane.c.b16.xlu0 %v1178_v14, 256  ;;  %3658 = vmatprep.subr.bf16.mxu0 %v3837_v15 }
  0x26   : > { %1184 = vbcast.lane.c.b16.xlu1 %v1178_v14, 272 }
  0x28   : > { %3659 = vmatpush3.bf16.msra.mxu0 %v3837_v15 }
  0x29   : > { %1188 = vbcast.lane.c.b16.xlu0 %v1178_v14, 288  ;;  %3660 = vmatprep.subr.bf16.mxu0 %v3838_v16 }
  0x2a   : > { %1192 = vbcast.lane.c.b16.xlu1 %v1178_v14, 304 }
  0x2c   : > { %3661 = vmatpush3.bf16.msra.mxu0 %v3838_v16 }
  0x2d   : > { %828 = vbcast.lane.c.b16.xlu0 %v810_v10, 320  ;;  %3662 = vmatprep.subr.bf16.mxu0 %v3839_v17 }
  0x2e   : > { %832 = vbcast.lane.c.b16.xlu1 %v810_v10, 336 }
  0x30   : > { %3663 = vmatpush3.bf16.msra.mxu0 %v3839_v17 }
  0x31   : > { %3664 = vmatprep.subr.bf16.mxu0 %v3840_v18  ;;  %1196 = vbcast.lane.c.b16.xlu0 %v1178_v14, 320 }
  0x32   : > { %1200 = vbcast.lane.c.b16.xlu1 %v1178_v14, 336 }
  0x34   : > { %3665 = vmatpush3.bf16.msra.mxu0 %v3840_v18 }
  0x35   : > { %836 = vbcast.lane.c.b16.xlu0 %v810_v10, 352 }
  0x36   : > { %840 = vbcast.lane.c.b16.xlu1 %v810_v10, 368 }
  0x37   : > { %3667 = vmatmul.mubr.bf16.vlgmr.msra.gmra.mxu0 %v3842_v19 }
  0x38   : > { %3670 = vmatprep.mubr.bf16.mxu0 %v3843_v20 }
  0x39   : > { %1204 = vbcast.lane.c.b16.xlu0 %v1178_v14, 352 }
  0x3a   : > { %1208 = vbcast.lane.c.b16.xlu1 %v1178_v14, 368 }
  0x3f   : > { %3671 = vmatmul.mubr.bf16.gmra.mxu0 %v3844_v21 }
  0x40   : > { %3674 = vmatprep.mubr.bf16.mxu0 %v3845_v22 }
  0x47   : > { %3675 = vmatmul.mubr.bf16.gmra.mxu0 %v3846_v23 }
  0x48   : > { %3678 = vmatprep.mubr.bf16.mxu0 %v3847_v24 }
  0x4f   : > { %3679 = vmatmul.mubr.bf16.gmra.mxu0 %v3848_v25 }
  0x8f   : > { %v813_v38 = vpop.permute.xlu0 %812 }
  0x90   : > { %vm842_vm0 = vcmp.gt.bf16.partialorder %v813_v38, 0  ;;  %v821_v39 = vpop.permute.xlu1 %820 }
  0x91   : > { %v850_v40 = vsel %vm842_vm0, 65537, %v3975_v7  ;;  %vm844_vm1 = vcmp.gt.bf16.partialorder %v821_v39, 0 }
  0x92   : > { %v864_v41 = vrot.slane %v850_v40, %v4176_v36  ;;  %v871_v42 = vrot.slane %v850_v40, %v4179_v37  ;;  %v852_v43 = vsel %vm844_vm1, 65537, %v3975_v7 }
  0x93   : > { %v817_v44 = vpop.permute.xlu0 %816  ;;  %v892_v45 = vrot.slane %v852_v43, %v4176_v36  ;;  %v899_v46 = vrot.slane %v852_v43, %v4179_v37 }
  0x94   : > { %vm970_vm2 = vcmp.ne.s16.totalorder %v864_v41, 0  ;;  %vm971_vm3 = vcmp.ne.s16.totalorder %v871_v42, 0  ;;  %vm843_vm4 = vcmp.gt.bf16.partialorder %v817_v44, 0  ;;  %v825_v47 = vpop.permute.xlu1 %824 }
  0x95   : > { %v851_v48 = vsel %vm843_vm4, 65537, %v3975_v7  ;;  %vm974_vm5 = vcmp.ne.s16.totalorder %v892_v45, 0  ;;  %vm975_vm6 = vcmp.ne.s16.totalorder %v899_v46, 0  ;;  %v987_v49 = vsel %vm971_vm3, 65537, %v3975_v7 }
  0x96   : > { %v878_v50 = vrot.slane %v851_v48, %v4176_v36  ;;  %v885_v51 = vrot.slane %v851_v48, %v4179_v37  ;;  %v1003_v52 = vunpack.c.l.b16 %v987_v49  ;;  %v986_v53 = vsel %vm970_vm2, 65537, %v3975_v7 }
  0x97   : > { %v1181_v54 = vpop.permute.xlu0 %1180  ;;  %v1002_v55 = vunpack.c.l.b16 %v986_v53  ;;  %vm845_vm7 = vcmp.gt.bf16.partialorder %v825_v47, 0  ;;  %v991_v56 = vsel %vm975_vm6, 65537, %v3975_v7  ;;  %v990_v57 = vsel %vm974_vm5, 65537, %v3975_v7 }
  0x98   : > { %vm4194_vm8 = vcmp.ne.s16.totalorder %v878_v50, 0  ;;  %vm973_vm9 = vcmp.ne.s16.totalorder %v885_v51, 0  ;;  %vm1210_vm10 = vcmp.gt.bf16.partialorder %v1181_v54, 0  ;;  %vm1019_vm11 = vcmp.ne.s32.totalorder %v1003_v52, 0  ;;  %v1185_v19 = vpop.permute.xlu1 %1184 }
  0x99   : > { %v1218_v59 = vsel %vm1210_vm10, 65537, %v3975_v7  ;;  %v1035_v60 = vsel %vm1019_vm11, 1, %v3975_v7  ;;  %vm1018_vm12 = vcmp.ne.s32.totalorder %v1002_v55, 0  ;;  %v853_v61 = vsel %vm845_vm7, 65537, %v3975_v7 }
  0x9a   : > { %v1232_v62 = vrot.slane %v1218_v59, %v4176_v36  ;;  %v1239_v63 = vrot.slane %v1218_v59, %v4179_v37  ;;  %1054 = vperm.xlu1 %3832, %v1035_v60   ;;  %v1034_v1 = vsel %vm1018_vm12, 1, %v3975_v7  ;;  %v906_v2 = vrot.slane %v853_v61, %v4176_v36 }
  0x9b   : > { %1051 = vperm.xlu0 %3831, %v1034_v1   ;;  %v913_v3 = vrot.slane %v853_v61, %v4179_v37  ;;  %v1189_v4 = vpop.permute.xlu0 %1188  ;;  %v989_v5 = vsel %vm973_vm9, 65537, %v3975_v7  ;;  %v988_v6 = vsel %vm4194_vm8, 65537, %v3975_v7  ;;  %v1007_v8 = vunpack.c.l.b16 %v991_v56 }
  0x9c   : > { %vm4210_vm13 = vcmp.ne.s16.totalorder %v1232_v62, 0  ;;  %vm1212_vm14 = vcmp.gt.bf16.partialorder %v1189_v4, 0  ;;  %v1005_v11 = vunpack.c.l.b16 %v989_v5  ;;  %v1004_v12 = vunpack.c.l.b16 %v988_v6  ;;  %v1193_v33 = vpop.permute.xlu1 %1192 }
  0x9d   : > { %vm977_vm15 = vcmp.ne.s16.totalorder %v913_v3, 0  ;;  %v1220_v10 = vsel %vm1212_vm14, 65537, %v3975_v7  ;;  %vm4215_vm0 = vcmp.ne.s16.totalorder %v906_v2, 0  ;;  %vm1023_vm1 = vcmp.ne.s32.totalorder %v1007_v8, 0 }
  0x9e   : > { %v1260_v14 = vrot.slane %v1220_v10, %v4176_v36  ;;  %v1006_v15 = vunpack.c.l.b16 %v990_v57  ;;  %vm4220_vm2 = vcmp.ne.s16.totalorder %v1239_v63, 0  ;;  %vm1021_vm3 = vcmp.ne.s32.totalorder %v1005_v11, 0 }
  0x9f   : > { %vm1020_vm4 = vcmp.ne.s32.totalorder %v1004_v12, 0  ;;  %v829_v17 = vpop.permute.xlu0 %828  ;;  %v993_v18 = vsel %vm977_vm15, 65537, %v3975_v7  ;;  %v1267_v20 = vrot.slane %v1220_v10, %v4179_v37  ;;  %v1037_v21 = vsel %vm1021_vm3, 1, %v3975_v7 }
  0xa0   : > { %v1036_v22 = vsel %vm1020_vm4, 1, %v3975_v7  ;;  %v1039_v23 = vsel %vm1023_vm1, 1, %v3975_v7  ;;  %vm4229_vm5 = vcmp.ne.s16.totalorder %v1260_v14, 0  ;;  %1060 = vperm.xlu0 %3831, %v1037_v21   ;;  %vm846_vm6 = vcmp.gt.bf16.partialorder %v829_v17, 0  ;;  %v833_v53 = vpop.permute.xlu1 %832 }
  0xa1   : > { %1057 = vperm.xlu1 %3832, %v1036_v22   ;;  %vm1022_vm7 = vcmp.ne.s32.totalorder %v1006_v15, 0  ;;  %v1009_v25 = vunpack.c.l.b16 %v993_v18  ;;  %v992_v26 = vsel %vm4215_vm0, 65537, %v3975_v7  ;;  %v854_v27 = vsel %vm846_vm6, 65537, %v3975_v7 }
  0xa2   : > { %v1038_v28 = vsel %vm1022_vm7, 1, %v3975_v7  ;;  %v1008_v29 = vunpack.c.l.b16 %v992_v26  ;;  %vm1211_vm8 = vcmp.gt.bf16.partialorder %v1185_v19, 0  ;;  %v920_v30 = vrot.slane %v854_v27, %v4176_v36 }
  0xa3   : > { %v927_v31 = vrot.slane %v854_v27, %v4179_v37  ;;  %vm1025_vm9 = vcmp.ne.s32.totalorder %v1009_v25, 0  ;;  %v1219_v32 = vsel %vm1211_vm8, 65537, %v3975_v7  ;;  %v1355_v40 = vsel %vm4220_vm2, 65537, %v3975_v7  ;;  %v1197_v62 = vpop.permute.xlu0 %1196 }
  0xa4   : > { %v1041_v34 = vsel %vm1025_vm9, 1, %v3975_v7  ;;  %vm1024_vm10 = vcmp.ne.s32.totalorder %v1008_v29, 0  ;;  %v1246_v35 = vrot.slane %v1219_v32, %v4176_v36  ;;  %v1253_v38 = vrot.slane %v1219_v32, %v4179_v37  ;;  %1066 = vperm.xlu0 %3831, %v1039_v23   ;;  %v1201_v11 = vpop.permute.xlu1 %1200 }
  0xa5   : > { %vm978_vm11 = vcmp.ne.s16.totalorder %v920_v30, 0  ;;  %vm979_vm12 = vcmp.ne.s16.totalorder %v927_v31, 0  ;;  %1063 = vperm.xlu1 %3832, %v1038_v28   ;;  %v1040_v39 = vsel %vm1024_vm10, 1, %v3975_v7  ;;  %v1371_v46 = vunpack.c.l.b16 %v1355_v40 }
  0xa6   : > { %vm4248_vm14 = vcmp.ne.s16.totalorder %v1246_v35, 0  ;;  %vm1341_vm15 = vcmp.ne.s16.totalorder %v1253_v38, 0  ;;  %v995_v42 = vsel %vm979_vm12, 65537, %v3975_v7  ;;  %v994_v43 = vsel %vm978_vm11, 65537, %v3975_v7 }
  0xa7   : > { %v1011_v44 = vunpack.c.l.b16 %v995_v42  ;;  %v1010_v45 = vunpack.c.l.b16 %v994_v43  ;;  %v1354_v47 = vsel %vm4210_vm13, 65537, %v3975_v7  ;;  %vm4257_vm0 = vcmp.ne.s16.totalorder %v1267_v20, 0  ;;  %v837_v19 = vpop.permute.xlu0 %836 }
  0xa8   : > { %v1370_v49 = vunpack.c.l.b16 %v1354_v47  ;;  %vm1213_vm1 = vcmp.gt.bf16.partialorder %v1193_v33, 0  ;;  %v1357_v50 = vsel %vm1341_vm15, 65537, %v3975_v7  ;;  %1072 = vperm.xlu0 %3831, %v1041_v34   ;;  %v1356_v52 = vsel %vm4248_vm14, 65537, %v3975_v7  ;;  %v841_v30 = vpop.permute.xlu1 %840 }
  0xa9   : > { %1069 = vperm.xlu1 %3832, %v1040_v39   ;;  %vm1027_vm2 = vcmp.ne.s32.totalorder %v1011_v44, 0  ;;  %vm1026_vm3 = vcmp.ne.s32.totalorder %v1010_v45, 0  ;;  %v1221_v51 = vsel %vm1213_vm1, 65537, %v3975_v7  ;;  %vm1387_vm13 = vcmp.ne.s32.totalorder %v1371_v46, 0 }
  0xaa   : > { %v1043_v54 = vsel %vm1027_vm2, 1, %v3975_v7  ;;  %v1042_v55 = vsel %vm1026_vm3, 1, %v3975_v7  ;;  %vm1386_vm4 = vcmp.ne.s32.totalorder %v1370_v49, 0  ;;  %v1274_v56 = vrot.slane %v1221_v51, %v4176_v36 }
  0xab   : > { %v1281_v57 = vrot.slane %v1221_v51, %v4179_v37  ;;  %v1373_v58 = vunpack.c.l.b16 %v1357_v50  ;;  %v1372_v59 = vunpack.c.l.b16 %v1356_v52  ;;  %vm847_vm6 = vcmp.gt.bf16.partialorder %v833_v53, 0  ;;  %v1205_v41 = vpop.permute.xlu0 %1204 }
  0xac   : > { %v1359_v60 = vsel %vm4257_vm0, 65537, %v3975_v7  ;;  %v1358_v61 = vsel %vm4229_vm5, 65537, %v3975_v7  ;;  %1078 = vperm.xlu0 %3831, %v1043_v54   ;;  %v1403_v63 = vsel %vm1387_vm13, 1, %v3975_v7  ;;  %v1402_v1 = vsel %vm1386_vm4, 1, %v3975_v7  ;;  %v1209_v52 = vpop.permute.xlu1 %1208 }
  0xad   : > { %1075 = vperm.xlu1 %3832, %v1042_v55   ;;  %vm1345_vm7 = vcmp.ne.s16.totalorder %v1281_v57, 0  ;;  %v855_v2 = vsel %vm847_vm6, 65537, %v3975_v7  ;;  %vm4279_vm8 = vcmp.ne.s16.totalorder %v1274_v56, 0  ;;  %vm1389_vm9 = vcmp.ne.s32.totalorder %v1373_v58, 0 }
  0xae   : > { %v934_v4 = vrot.slane %v855_v2, %v4176_v36  ;;  %v941_v5 = vrot.slane %v855_v2, %v4179_v37  ;;  %vm1388_vm5 = vcmp.ne.s32.totalorder %v1372_v59, 0  ;;  %v1375_v6 = vunpack.c.l.b16 %v1359_v60 }
  0xaf   : > { %v1374_v8 = vunpack.c.l.b16 %v1358_v61  ;;  %vm1214_vm10 = vcmp.gt.bf16.partialorder %v1197_v62, 0  ;;  %v1361_v10 = vsel %vm1345_vm7, 65537, %v3975_v7  ;;  %v1405_v12 = vsel %vm1389_vm9, 1, %v3975_v7 }
  0xb0   : > { %v1222_v9 = vsel %vm1214_vm10, 65537, %v3975_v7  ;;  %1422 = vperm.xlu0 %3831, %v1403_v63   ;;  %vm980_vm11 = vcmp.ne.s16.totalorder %v934_v4, 0  ;;  %vm981_vm12 = vcmp.ne.s16.totalorder %v941_v5, 0  ;;  %v1404_v14 = vsel %vm1388_vm5, 1, %v3975_v7 }
  0xb1   : > { %1419 = vperm.xlu1 %3832, %v1402_v1   ;;  %v1295_v13 = vrot.slane %v1222_v9, %v4179_v37  ;;  %vm1391_vm14 = vcmp.ne.s32.totalorder %v1375_v6, 0  ;;  %v1288_v15 = vrot.slane %v1222_v9, %v4176_v36  ;;  %v1360_v16 = vsel %vm4279_vm8, 65537, %v3975_v7 }
  0xb2   : > { %vm1390_vm15 = vcmp.ne.s32.totalorder %v1374_v8, 0  ;;  %v1377_v17 = vunpack.c.l.b16 %v1361_v10  ;;  %v1376_v18 = vunpack.c.l.b16 %v1360_v16  ;;  %vm1215_vm0 = vcmp.gt.bf16.partialorder %v1201_v11, 0 }
  0xb3   : > { %v1223_v20 = vsel %vm1215_vm0, 65537, %v3975_v7  ;;  %v997_v21 = vsel %vm981_vm12, 65537, %v3975_v7  ;;  %v996_v22 = vsel %vm980_vm11, 65537, %v3975_v7  ;;  %v1407_v23 = vsel %vm1391_vm14, 1, %v3975_v7 }
  0xb4   : > { %1428 = vperm.xlu0 %3831, %v1405_v12   ;;  %vm1347_vm1 = vcmp.ne.s16.totalorder %v1295_v13, 0  ;;  %v1302_v24 = vrot.slane %v1223_v20, %v4176_v36  ;;  %v1309_v25 = vrot.slane %v1223_v20, %v4179_v37  ;;  %v1406_v26 = vsel %vm1390_vm15, 1, %v3975_v7 }
  0xb5   : > { %1425 = vperm.xlu1 %3832, %v1404_v14   ;;  %vm1346_vm2 = vcmp.ne.s16.totalorder %v1288_v15, 0  ;;  %v1013_v27 = vunpack.c.l.b16 %v997_v21  ;;  %vm848_vm3 = vcmp.gt.bf16.partialorder %v837_v19, 0  ;;  %vm1393_vm13 = vcmp.ne.s32.totalorder %v1377_v17, 0 }
  0xb6   : > { %vm1392_vm4 = vcmp.ne.s32.totalorder %v1376_v18, 0  ;;  %v1012_v28 = vunpack.c.l.b16 %v996_v22  ;;  %v856_v29 = vsel %vm848_vm3, 65537, %v3975_v7  ;;  %vm4302_vm6 = vcmp.ne.s16.totalorder %v1302_v24, 0 }
  0xb7   : > { %v1363_v32 = vsel %vm1347_vm1, 65537, %v3975_v7  ;;  %vm1349_vm7 = vcmp.ne.s16.totalorder %v1309_v25, 0  ;;  %v948_v33 = vrot.slane %v856_v29, %v4176_v36  ;;  %v955_v34 = vrot.slane %v856_v29, %v4179_v37  ;;  %v3391_v29 = vld [vmem:[%s5115_s4] ss:$0 sm:$0xff] }
  0xb8   : > { %1434 = vperm.xlu0 %3831, %v1407_v23   ;;  %v1362_v35 = vsel %vm1346_vm2, 65537, %v3975_v7  ;;  %v1409_v38 = vsel %vm1393_vm13, 1, %v3975_v7  ;;  %v1408_v39 = vsel %vm1392_vm4, 1, %v3975_v7  ;;  %vm4312_vm8 = vcmp.ne.s32.totalorder %v1013_v27, 0 }
  0xb9   : > { %1431 = vperm.xlu1 %3832, %v1406_v26   ;;  %vm849_vm9 = vcmp.gt.bf16.partialorder %v841_v30, 0  ;;  %vm1028_vm5 = vcmp.ne.s32.totalorder %v1012_v28, 0  ;;  %v1379_v42 = vunpack.c.l.b16 %v1363_v32  ;;  %v1378_v43 = vunpack.c.l.b16 %v1362_v35 }
  0xba   : > { %v857_v44 = vsel %vm849_vm9, 65537, %v3975_v7  ;;  %v1365_v46 = vsel %vm1349_vm7, 65537, %v3975_v7  ;;  %v1364_v47 = vsel %vm4302_vm6, 65537, %v3975_v7  ;;  %vm982_vm10 = vcmp.ne.s16.totalorder %v948_v33, 0 }
  0xbb   : > { %v962_v45 = vrot.slane %v857_v44, %v4176_v36  ;;  %vm983_vm11 = vcmp.ne.s16.totalorder %v955_v34, 0  ;;  %v969_v48 = vrot.slane %v857_v44, %v4179_v37  ;;  %vm1216_vm12 = vcmp.gt.bf16.partialorder %v1205_v41, 0 }
  0xbc   : > { %1440 = vperm.xlu0 %3831, %v1409_v38   ;;  %v1045_v49 = vsel %vm4312_vm8, 1, %v3975_v7  ;;  %v1044_v50 = vsel %vm1028_vm5, 1, %v3975_v7  ;;  %v1224_v51 = vsel %vm1216_vm12, 65537, %v3975_v7  ;;  %vm1395_vm14 = vcmp.ne.s32.totalorder %v1379_v42, 0 }
  0xbd   : > { %1437 = vperm.xlu1 %3832, %v1408_v39   ;;  %vm1394_vm15 = vcmp.ne.s32.totalorder %v1378_v43, 0  ;;  %v1381_v53 = vunpack.c.l.b16 %v1365_v46  ;;  %v1380_v54 = vunpack.c.l.b16 %v1364_v47  ;;  %vm4328_vm0 = vcmp.ne.s16.totalorder %v962_v45, 0 }
  0xbe   : > { %v999_v56 = vsel %vm983_vm11, 65537, %v3975_v7  ;;  %v998_v57 = vsel %vm982_vm10, 65537, %v3975_v7  ;;  %vm985_vm1 = vcmp.ne.s16.totalorder %v969_v48, 0  ;;  %v1316_v58 = vrot.slane %v1224_v51, %v4176_v36 }
  0xbf   : > { %v1323_v59 = vrot.slane %v1224_v51, %v4179_v37  ;;  %vm1217_vm2 = vcmp.gt.bf16.partialorder %v1209_v52, 0  ;;  %v1411_v60 = vsel %vm1395_vm14, 1, %v3975_v7  ;;  %v1410_v61 = vsel %vm1394_vm15, 1, %v3975_v7 }
  0xc0   : > { %1084 = vperm.xlu0 %3831, %v1045_v49   ;;  %v1225_v62 = vsel %vm1217_vm2, 65537, %v3975_v7  ;;  %vm1397_vm3 = vcmp.ne.s32.totalorder %v1381_v53, 0  ;;  %vm1396_vm13 = vcmp.ne.s32.totalorder %v1380_v54, 0  ;;  %v1015_v63 = vunpack.c.l.b16 %v999_v56 }
  0xc1   : > { %1081 = vperm.xlu1 %3832, %v1044_v50   ;;  %v1014_v1 = vunpack.c.l.b16 %v998_v57  ;;  %v1001_v2 = vsel %vm985_vm1, 65537, %v3975_v7  ;;  %v1000_v3 = vsel %vm4328_vm0, 65537, %v3975_v7  ;;  %vm1350_vm4 = vcmp.ne.s16.totalorder %v1316_v58, 0 }
  0xc2   : > { %vm1351_vm6 = vcmp.ne.s16.totalorder %v1323_v59, 0  ;;  %v1330_v4 = vrot.slane %v1225_v62, %v4176_v36  ;;  %v1337_v5 = vrot.slane %v1225_v62, %v4179_v37  ;;  %v1413_v6 = vsel %vm1397_vm3, 1, %v3975_v7 }
  0xc3   : > { %v1412_v8 = vsel %vm1396_vm13, 1, %v3975_v7  ;;  %vm1031_vm7 = vcmp.ne.s32.totalorder %v1015_v63, 0  ;;  %vm1030_vm8 = vcmp.ne.s32.totalorder %v1014_v1, 0  ;;  %v1017_v9 = vunpack.c.l.b16 %v1001_v2 }
  0xc4   : > { %1446 = vperm.xlu0 %3831, %v1411_v60   ;;  %v1016_v10 = vunpack.c.l.b16 %v1000_v3  ;;  %v1367_v11 = vsel %vm1351_vm6, 65537, %v3975_v7  ;;  %v1366_v12 = vsel %vm1350_vm4, 65537, %v3975_v7  ;;  %vm1352_vm9 = vcmp.ne.s16.totalorder %v1330_v4, 0 }
  0xc5   : > { %1443 = vperm.xlu1 %3832, %v1410_v61   ;;  %vm1353_vm5 = vcmp.ne.s16.totalorder %v1337_v5, 0  ;;  %v1047_v36 = vsel %vm1031_vm7, 1, %v3975_v7  ;;  %v1046_v37 = vsel %vm1030_vm8, 1, %v3975_v7  ;;  %v3978_v13 = vmov 0.0  }
  0xc6   : > { %3682 = vmatprep.subr.bf16.mxu0 %v3978_v13  ;;  %vm3979_vm10 = vmmov 0   ;;  %vm1033_vm11 = vcmp.ne.s32.totalorder %v1017_v9, 0  ;;  %vm1032_vm12 = vcmp.ne.s32.totalorder %v1016_v10, 0  ;;  %v1383_v14 = vunpack.c.l.b16 %v1367_v11 }
  0xc7   : > { %3698 = vmatprep.mubr.msk.bf16.mxu0 %vm3979_vm10, %v3978_v13  ;;  %v1382_v15 = vunpack.c.l.b16 %v1366_v12  ;;  %v1369_v16 = vsel %vm1353_vm5, 65537, %v3975_v7  ;;  %v1368_v17 = vsel %vm1352_vm9, 65537, %v3975_v7  ;;  %v1049_v18 = vsel %vm1033_vm11, 1, %v3975_v7 }
  0xc8   : > { %1452 = vperm.xlu0 %3831, %v1413_v6   ;;  %v1048_v19 = vsel %vm1032_vm12, 1, %v3975_v7  ;;  %vm1399_vm14 = vcmp.ne.s32.totalorder %v1383_v14, 0  ;;  %v1385_v20 = vunpack.c.l.b16 %v1369_v16  ;;  %v1384_v21 = vunpack.c.l.b16 %v1368_v17 }
  0xc9   : > { %1449 = vperm.xlu1 %3832, %v1412_v8   ;;  %vm1398_vm15 = vcmp.ne.s32.totalorder %v1382_v15, 0  ;;  %v1415_v22 = vsel %vm1399_vm14, 1, %v3975_v7  ;;  %vm541_vm2 = vcmask 517120   ;;  %v3980_v26 = vmov -1e+30  }
  0xca   : > { %v1414_v23 = vsel %vm1398_vm15, 1, %v3975_v7  ;;  %vm1401_vm0 = vcmp.ne.s32.totalorder %v1385_v20, 0  ;;  %vm1400_vm1 = vcmp.ne.s32.totalorder %v1384_v21, 0  ;;  %542 = vst.msk [vmem:[#allocation3] sm:$0x3] %vm541_vm2, %v3980_v26  ;;  %vm1130_vm3 = vcmask 523264  }
  0xcb   : > { %v1417_v24 = vsel %vm1401_vm0, 1, %v3975_v7  ;;  %v1416_v25 = vsel %vm1400_vm1, 1, %v3975_v7  ;;  %543 = vst.msk [vmem:[#allocation4] sm:$0x3] %vm541_vm2, %v3978_v13 }
  0xcc   : > { %1090 = vperm.xlu0 %3831, %v1047_v36  }
  0xcd   : > { %1087 = vperm.xlu1 %3832, %v1046_v37  }
  0xd0   : > { %1096 = vperm.xlu0 %3831, %v1049_v18  }
  0xd1   : > { %1093 = vperm.xlu1 %3832, %v1048_v19  }
  0xd4   : > { %1458 = vperm.xlu0 %3831, %v1415_v22  }
  0xd5   : > { %1455 = vperm.xlu1 %3832, %v1414_v23  }
  0xd8   : > { %1464 = vperm.xlu0 %3831, %v1417_v24  }
  0xd9   : > { %1461 = vperm.xlu1 %3832, %v1416_v25  }
  0xf7   : > { %v3668_v27 = vpop.f32.mrf.mxu0 }
  0xf8   : > { %v726_v33 = vadd.f32 %v3668_v27, %v3391_v29 }
  0xf9   : > { %v717_v28 = vpop.f32.mrf.mxu0 }
  0xfa   : > { %v718_v31 = vadd.f32 %v3391_v29, %v717_v28  ;;  %v4373_v41 = vmax.f32 %v726_v33, 0.0 }
  0xfb   : > { %v3669_v30 = vpop.f32.mrf.mxu0 }
  0xfc   : > { %v729_v32 = vadd.f32 %v3669_v30, %v3391_v29  ;;  %v4369_v39 = vmax.f32 %v718_v31, 0.0 }
  0xfd   : > { %v720_v7 = vpop.f32.mrf.mxu0 }
  0xfe   : > { %v721_v34 = vadd.f32 %v3391_v29, %v720_v7  ;;  %v4367_v35 = vmax.f32 %v729_v32, 0.0 }
  0xff   : > { %v3672_v38 = vpop.f32.mrf.mxu0 }
 0x100   : > { %v4371_v40 = vmax.f32 %v721_v34, 0.0  ;;  %v4381_v44 = vpack.c.bf16 %v4367_v35, %v4373_v41  ;;  %v742_v48 = vadd.f32 %v3672_v38, %v3391_v29 }
 0x101   : > { %v733_v42 = vpop.f32.mrf.mxu0 }
 0x102   : > { %v4377_v43 = vpack.c.bf16 %v4371_v40, %v4369_v39  ;;  %v734_v46 = vadd.f32 %v3391_v29, %v733_v42  ;;  %v4393_v55 = vmax.f32 %v742_v48, 0.0 }
 0x103   : > { %v3673_v45 = vpop.f32.mrf.mxu0 }
 0x104   : > { %v745_v47 = vadd.f32 %v3673_v45, %v3391_v29  ;;  %3710 = vmatprep.mubr.msk.bf16.mxu1 %vm1130_vm3, %v4377_v43  ;;  %v4389_v53 = vmax.f32 %v734_v46, 0.0 }
 0x105   : > { %v736_v49 = vpop.f32.mrf.mxu0  ;;  %3711 = vmatmul.mubr.msk.bf16.vlgmr.msra.gmra.mxu1 %vm1130_vm3, %v4381_v44 }
 0x106   : > { %v737_v50 = vadd.f32 %v3391_v29, %v736_v49  ;;  %v4387_v51 = vmax.f32 %v745_v47, 0.0 }
 0x107   : > { %v3676_v52 = vpop.f32.mrf.mxu0 }
 0x108   : > { %v4391_v54 = vmax.f32 %v737_v50, 0.0  ;;  %v4401_v58 = vpack.c.bf16 %v4387_v51, %v4393_v55  ;;  %v758_v62 = vadd.f32 %v3676_v52, %v3391_v29 }
 0x109   : > { %v749_v56 = vpop.f32.mrf.mxu0 }
 0x10a   : > { %v4397_v57 = vpack.c.bf16 %v4391_v54, %v4389_v53  ;;  %v750_v60 = vadd.f32 %v3391_v29, %v749_v56  ;;  %v4413_v6 = vmax.f32 %v758_v62, 0.0 }
 0x10b   : > { %v3677_v59 = vpop.f32.mrf.mxu0 }
 0x10c   : > { %v761_v61 = vadd.f32 %v3677_v59, %v3391_v29  ;;  %3714 = vmatprep.mubr.msk.bf16.mxu1 %vm1130_vm3, %v4397_v57  ;;  %v4409_v4 = vmax.f32 %v750_v60, 0.0 }
 0x10d   : > { %v752_v63 = vpop.f32.mrf.mxu0  ;;  %3715 = vmatmul.mubr.msk.bf16.gmra.mxu1 %vm1130_vm3, %v4401_v58 }
 0x10e   : > { %v753_v1 = vadd.f32 %v3391_v29, %v752_v63  ;;  %v4407_v2 = vmax.f32 %v761_v61, 0.0 }
 0x10f   : > { %v3680_v3 = vpop.f32.mrf.mxu0 }
 0x110   : > { %v4411_v5 = vmax.f32 %v753_v1, 0.0  ;;  %v774_v10 = vadd.f32 %v3680_v3, %v3391_v29  ;;  %v801_v11 = vpack.c.bf16 %v4407_v2, %v4413_v6 }
 0x111   : > { %v765_v8 = vpop.f32.mrf.mxu0 }
 0x112   : > { %v800_v9 = vpack.c.bf16 %v4411_v5, %v4409_v4  ;;  %v766_v36 = vadd.f32 %v3391_v29, %v765_v8  ;;  %v4421_v15 = vmax.f32 %v774_v10, 0.0 }
 0x113   : > { %v3681_v12 = vpop.f32.mrf.mxu0 }
 0x114   : > { %v777_v37 = vadd.f32 %v3681_v12, %v3391_v29  ;;  %3718 = vmatprep.mubr.msk.bf16.mxu1 %vm1130_vm3, %v800_v9  ;;  %v4425_v20 = vmax.f32 %v766_v36, 0.0 }
 0x115   : > { %v768_v14 = vpop.f32.mrf.mxu0  ;;  %3719 = vmatmul.mubr.msk.bf16.gmra.mxu1 %vm1130_vm3, %v801_v11  ;;  %v1055_v17 = vpop.permute.xlu1 %1054 }
 0x116   : > { %v4423_v16 = vmax.f32 %v777_v37, 0.0  ;;  %v1052_v18 = vpop.permute.xlu0 %1051  ;;  %v769_v19 = vadd.f32 %v3391_v29, %v768_v14  ;;  %vm1099_vm13 = vcmp.eq.s32.totalorder %v1055_v17, 1 }
 0x117   : > { %vm1098_vm4 = vcmp.eq.s32.totalorder %v1052_v18, 1  ;;  %v1115_v26 = vsel %vm1099_vm13, %v4371_v40, -1e+30 }
 0x118   : > { %v803_v21 = vpack.c.bf16 %v4423_v16, %v4421_v15  ;;  %v4429_v22 = vmax.f32 %v769_v19, 0.0  ;;  %v1114_v27 = vsel %vm1098_vm4, %v4369_v39, -1e+30  ;;  %v4442_v32 = vsel %vm1130_vm3, %v1115_v26, -inf }
 0x119   : > { %v4445_v33 = vsel %vm1130_vm3, %v1114_v27, -inf }
 0x11a   : > { %v802_v23 = vpack.c.bf16 %v4429_v22, %v4425_v20  ;;  %3683 = vmatpush3.bf16.msra.mxu0 %v803_v21 }
 0x11b   : > { %3684 = vmatprep.subr.bf16.mxu0 %v3978_v13  ;;  %v1061_v25 = vpop.permute.xlu0 %1060 }
 0x11c   : > { %v1058_v24 = vpop.permute.xlu1 %1057  ;;  %3722 = vmatprep.mubr.msk.bf16.mxu1 %vm1130_vm3, %v802_v23  ;;  %vm1101_vm7 = vcmp.eq.s32.totalorder %v1061_v25, 1 }
 0x11d   : > { %3723 = vmatmul.mubr.msk.bf16.gmra.mxu1 %vm1130_vm3, %v803_v21  ;;  %vm1100_vm6 = vcmp.eq.s32.totalorder %v1058_v24, 1  ;;  %v1117_v42 = vsel %vm1101_vm7, %v4367_v35, -1e+30 }
 0x11e   : > { %3685 = vmatpush3.bf16.msra.mxu0 %v802_v23  ;;  %v1116_v38 = vsel %vm1100_vm6, %v4373_v41, -1e+30  ;;  %v4466_v56 = vsel %vm1130_vm3, %v1117_v42, -inf }
 0x11f   : > { %3686 = vmatprep.subr.bf16.mxu0 %v3978_v13  ;;  %v1067_v29 = vpop.permute.xlu0 %1066  ;;  %v4463_v52 = vsel %vm1130_vm3, %v1116_v38, -inf }
 0x120   : > { %v1064_v28 = vpop.permute.xlu1 %1063  ;;  %vm1103_vm9 = vcmp.eq.s32.totalorder %v1067_v29, 1 }
 0x121   : > { %vm1102_vm8 = vcmp.eq.s32.totalorder %v1064_v28, 1  ;;  %v1119_v31 = vsel %vm1103_vm9, %v4391_v54, -1e+30 }
 0x122   : > { %v1118_v30 = vsel %vm1102_vm8, %v4389_v53, -1e+30  ;;  %3687 = vmatpush3.bf16.msra.mxu0 %v801_v11  ;;  %v4451_v34 = vsel %vm1130_vm3, %v1119_v31, -inf }
 0x123   : > { %v4448_v7 = vsel %vm1130_vm3, %v1118_v30, -inf  ;;  %3688 = vmatprep.subr.bf16.mxu0 %v3978_v13  ;;  %v1138_v46 = vmax.f32 %v4442_v32, %v4451_v34  ;;  %v1073_v48 = vpop.permute.xlu0 %1072 }
 0x124   : > { %v1136_v45 = vmax.f32 %v4445_v33, %v4448_v7  ;;  %v1070_v47 = vpop.permute.xlu1 %1069  ;;  %vm1105_vm10 = vcmp.eq.s32.totalorder %v1073_v48, 1 }
 0x125   : > { %vm1104_vm5 = vcmp.eq.s32.totalorder %v1070_v47, 1  ;;  %v1121_v50 = vsel %vm1105_vm10, %v4387_v51, -1e+30 }
 0x126   : > { %v1120_v49 = vsel %vm1104_vm5, %v4393_v55, -1e+30  ;;  %3689 = vmatpush3.bf16.msra.mxu0 %v800_v9  ;;  %v4472_v60 = vsel %vm1130_vm3, %v1121_v50, -inf }
 0x127   : > { %v4469_v59 = vsel %vm1130_vm3, %v1120_v49, -inf  ;;  %3690 = vmatprep.subr.bf16.mxu0 %v3978_v13  ;;  %v1142_v62 = vmax.f32 %v4466_v56, %v4472_v60  ;;  %v1079_v1 = vpop.permute.xlu0 %1078 }
 0x128   : > { %v1140_v61 = vmax.f32 %v4463_v52, %v4469_v59  ;;  %v1076_v63 = vpop.permute.xlu1 %1075  ;;  %vm1107_vm7 = vcmp.eq.s32.totalorder %v1079_v1, 1 }
 0x129   : > { %vm1106_vm6 = vcmp.eq.s32.totalorder %v1076_v63, 1  ;;  %v1123_v47 = vsel %vm1107_vm7, %v4411_v5, -1e+30 }
 0x12a   : > { %3691 = vmatpush3.bf16.msra.mxu0 %v4401_v58  ;;  %v1122_v31 = vsel %vm1106_vm6, %v4409_v4, -1e+30 }
 0x12b   : > { %3692 = vmatprep.subr.bf16.mxu0 %v3978_v13  ;;  %v1423_v8 = vpop.permute.xlu0 %1422  ;;  %v1143_v1 = vsel %vm1130_vm3, %v1122_v31, -inf }
 0x12c   : > { %v1420_v3 = vpop.permute.xlu1 %1419  ;;  %vm1467_vm12 = vcmp.eq.s32.totalorder %v1423_v8, 1  ;;  %v1145_v8 = vsel %vm1130_vm3, %v1123_v47, -inf }
 0x12d   : > { %vm1466_vm11 = vcmp.eq.s32.totalorder %v1420_v3, 1  ;;  %v1483_v58 = vsel %vm1467_vm12, %v4371_v40, -1e+30 }
 0x12e   : > { %3693 = vmatpush3.bf16.msra.mxu0 %v4397_v57  ;;  %v1482_v11 = vsel %vm1466_vm11, %v4369_v39, -1e+30 }
 0x12f   : > { %3694 = vmatprep.subr.bf16.mxu0 %v3978_v13  ;;  %v1429_v10 = vpop.permute.xlu0 %1428 }
 0x130   : > { %v1426_v9 = vpop.permute.xlu1 %1425  ;;  %vm1469_vm15 = vcmp.eq.s32.totalorder %v1429_v10, 1 }
 0x131   : > { %vm1468_vm14 = vcmp.eq.s32.totalorder %v1426_v9, 1  ;;  %v1485_v17 = vsel %vm1469_vm15, %v4367_v35, -1e+30 }
 0x132   : > { %3695 = vmatpush3.bf16.msra.mxu0 %v4381_v44  ;;  %v1498_v44 = vsel %vm1130_vm3, %v1482_v11, -inf  ;;  %v1484_v14 = vsel %vm1468_vm14, %v4373_v41, -1e+30  ;;  %v1501_v24 = vsel %vm1130_vm3, %v1485_v17, -inf }
 0x133   : > { %3696 = vmatprep.subr.bf16.mxu0 %v3978_v13  ;;  %v1435_v36 = vpop.permute.xlu0 %1434  ;;  %v1499_v13 = vsel %vm1130_vm3, %v1483_v58, -inf  ;;  %v1500_v23 = vsel %vm1130_vm3, %v1484_v14, -inf }
 0x134   : > { %v1432_v12 = vpop.permute.xlu1 %1431  ;;  %vm1471_vm1 = vcmp.eq.s32.totalorder %v1435_v36, 1 }
 0x135   : > { %vm1470_vm0 = vcmp.eq.s32.totalorder %v1432_v12, 1  ;;  %v1487_v37 = vsel %vm1471_vm1, %v4391_v54, -1e+30 }
 0x136   : > { %v1486_v57 = vsel %vm1470_vm0, %v4389_v53, -1e+30  ;;  %3697 = vmatpush3.bf16.msra.mxu0 %v4377_v43  ;;  %v1504_v40 = vsel %vm1130_vm3, %v1487_v37, -inf  ;;  %v1144_v37 = vmax.f32 %v1136_v45, %v1143_v1 }
 0x137   : > { %v1502_v39 = vsel %vm1130_vm3, %v1486_v57, -inf  ;;  %v1505_v19 = vmax.f32 %v1499_v13, %v1504_v40  ;;  %v1441_v53 = vpop.permute.xlu0 %1440 }
 0x138   : > { %v1503_v18 = vmax.f32 %v1498_v44, %v1502_v39  ;;  %v1438_v21 = vpop.permute.xlu1 %1437  ;;  %vm1473_vm4 = vcmp.eq.s32.totalorder %v1441_v53, 1 }
 0x139   : > { %vm1472_vm13 = vcmp.eq.s32.totalorder %v1438_v21, 1  ;;  %3699 = vmatmul.mubr.bf16.vlgmr.msra.gmra.mxu0 %v4104_v0  ;;  %v1489_v54 = vsel %vm1473_vm4, %v4387_v51, -1e+30 }
 0x13a   : > { %v1488_v43 = vsel %vm1472_vm13, %v4393_v55, -1e+30  ;;  %v1508_v35 = vsel %vm1130_vm3, %v1489_v54, -inf }
 0x13b   : > { %v1506_v41 = vsel %vm1130_vm3, %v1488_v43, -inf  ;;  %v1509_v26 = vmax.f32 %v1501_v24, %v1508_v35  ;;  %v1085_v28 = vpop.permute.xlu0 %1084 }
 0x13c   : > { %v1507_v25 = vmax.f32 %v1500_v23, %v1506_v41  ;;  %v1082_v27 = vpop.permute.xlu1 %1081  ;;  %vm1109_vm10 = vcmp.eq.s32.totalorder %v1085_v28, 1 }
 0x13d   : > { %vm1108_vm5 = vcmp.eq.s32.totalorder %v1082_v27, 1  ;;  %v1125_v11 = vsel %vm1109_vm10, %v4407_v2, -1e+30 }
 0x13e   : > { %v1124_v9 = vsel %vm1108_vm5, %v4413_v6, -1e+30  ;;  %v1149_v39 = vsel %vm1130_vm3, %v1125_v11, -inf }
 0x13f   : > { %v1447_v30 = vpop.permute.xlu0 %1446  ;;  %v1147_v44 = vsel %vm1130_vm3, %v1124_v9, -inf  ;;  %v1150_v34 = vmax.f32 %v1142_v62, %v1149_v39  ;;  %v1535_v9 = vld [vmem:[#allocation3 + $0x1] sm:$0x1] }
 0x140   : > { %v1444_v29 = vpop.permute.xlu1 %1443  ;;  %vm1475_vm9 = vcmp.eq.s32.totalorder %v1447_v30, 1  ;;  %v1148_v32 = vmax.f32 %v1140_v61, %v1147_v44 }
 0x141   : > { %vm1474_vm8 = vcmp.eq.s32.totalorder %v1444_v29, 1  ;;  %v1491_v55 = vsel %vm1475_vm9, %v4411_v5, -1e+30 }
 0x142   : > { %v1490_v51 = vsel %vm1474_vm8, %v4409_v4, -1e+30  ;;  %v1512_v42 = vsel %vm1130_vm3, %v1491_v55, -inf  ;;  %vm1170_vm8 = vcmask 516096  }
 0x143   : > { %v1510_v38 = vsel %vm1130_vm3, %v1490_v51, -inf  ;;  %v1513_v49 = vmax.f32 %v1505_v19, %v1512_v42  ;;  %v1453_v63 = vpop.permute.xlu0 %1452 }
 0x144   : > { %v1511_v48 = vmax.f32 %v1503_v18, %v1510_v38  ;;  %v1450_v50 = vpop.permute.xlu1 %1449  ;;  %vm1477_vm12 = vcmp.eq.s32.totalorder %v1453_v63, 1  ;;  %v1168_v63 = vld [vmem:[#allocation3] sm:$0x1] }
 0x145   : > { %vm1476_vm11 = vcmp.eq.s32.totalorder %v1450_v50, 1  ;;  %v1493_v4 = vsel %vm1477_vm12, %v4407_v2, -1e+30 }
 0x146   : > { %v1492_v3 = vsel %vm1476_vm11, %v4413_v6, -1e+30  ;;  %v1516_v10 = vsel %vm1130_vm3, %v1493_v4, -inf  ;;  %v1146_v6 = vmax.f32 %v1138_v46, %v1145_v8 }
 0x147   : > { %v1514_v5 = vsel %vm1130_vm3, %v1492_v3, -inf  ;;  %v1517_v12 = vmax.f32 %v1509_v26, %v1516_v10  ;;  %v1091_v57 = vpop.permute.xlu0 %1090 }
 0x148   : > { %v1515_v58 = vmax.f32 %v1507_v25, %v1514_v5  ;;  %v1088_v36 = vpop.permute.xlu1 %1087  ;;  %vm1111_vm15 = vcmp.eq.s32.totalorder %v1091_v57, 1 }
 0x149   : > { %vm1110_vm14 = vcmp.eq.s32.totalorder %v1088_v36, 1  ;;  %v1127_v2 = vsel %vm1111_vm15, %v4429_v22, -1e+30 }
 0x14a   : > { %v1126_v13 = vsel %vm1110_vm14, %v4425_v20, -1e+30  ;;  %v1153_v14 = vsel %vm1130_vm3, %v1127_v2, -inf }
 0x14b   : > { %v1151_v40 = vsel %vm1130_vm3, %v1126_v13, -inf  ;;  %v1154_v7 = vmax.f32 %v1146_v6, %v1153_v14  ;;  %v1097_v17 = vpop.permute.xlu0 %1096 }
 0x14c   : > { %v1152_v33 = vmax.f32 %v1144_v37, %v1151_v40  ;;  %v1094_v45 = vpop.permute.xlu1 %1093  ;;  %vm1113_vm1 = vcmp.eq.s32.totalorder %v1097_v17, 1 }
 0x14d   : > { %vm1112_vm0 = vcmp.eq.s32.totalorder %v1094_v45, 1  ;;  %v1129_v19 = vsel %vm1113_vm1, %v4423_v16, -1e+30 }
 0x14e   : > { %v1159_v46 = vmax.f32 %v1152_v33, %v1154_v7  ;;  %v1128_v18 = vsel %vm1112_vm0, %v4421_v15, -1e+30  ;;  %v1157_v53 = vsel %vm1130_vm3, %v1129_v19, -inf }
 0x14f   : > { %v1155_v21 = vsel %vm1130_vm3, %v1128_v18, -inf  ;;  %v1158_v54 = vmax.f32 %v1150_v34, %v1157_v53  ;;  %v1459_v52 = vpop.permute.xlu0 %1458 }
 0x150   : > { %v1156_v43 = vmax.f32 %v1148_v32, %v1155_v21  ;;  %v1456_v23 = vpop.permute.xlu1 %1455  ;;  %vm1479_vm4 = vcmp.eq.s32.totalorder %v1459_v52, 1 }
 0x151   : > { %vm1478_vm13 = vcmp.eq.s32.totalorder %v1456_v23, 1  ;;  %v1495_v56 = vsel %vm1479_vm4, %v4429_v22, -1e+30 }
 0x152   : > { %v1160_v59 = vmax.f32 %v1156_v43, %v1158_v54  ;;  %v1494_v61 = vsel %vm1478_vm13, %v4425_v20, -1e+30  ;;  %v1520_v62 = vsel %vm1130_vm3, %v1495_v56, -inf  ;;  %v1538_v43 = vld [vmem:[#allocation4] sm:$0x3] }
 0x153   : > { %v1518_v60 = vsel %vm1130_vm3, %v1494_v61, -inf  ;;  %v1521_v35 = vmax.f32 %v1513_v49, %v1520_v62  ;;  %v1465_v26 = vpop.permute.xlu0 %1464 }
 0x154   : > { %v1161_v24 = vmax.f32 %v1159_v46, %v1160_v59  ;;  %v1519_v41 = vmax.f32 %v1511_v48, %v1518_v60  ;;  %v1462_v25 = vpop.permute.xlu1 %1461  ;;  %vm1481_vm7 = vcmp.eq.s32.totalorder %v1465_v26, 1 }
 0x155   : > { %vm1480_vm6 = vcmp.eq.s32.totalorder %v1462_v25, 1  ;;  %v1497_v30 = vsel %vm1481_vm7, %v4423_v16, -1e+30 }
 0x156   : > { %v1162_v27 = vrot.slane %v1161_v24, 4  ;;  %v1526_v28 = vmax.f32 %v1519_v41, %v1521_v35  ;;  %v1496_v29 = vsel %vm1480_vm6, %v4421_v15, -1e+30  ;;  %v1524_v22 = vsel %vm1130_vm3, %v1497_v30, -inf }
 0x157   : > { %v1522_v20 = vsel %vm1130_vm3, %v1496_v29, -inf  ;;  %v1525_v31 = vmax.f32 %v1517_v12, %v1524_v22 }
 0x158   : > { %v1163_v51 = vmax.f32 %v1161_v24, %v1162_v27  ;;  %v1523_v55 = vmax.f32 %v1515_v58, %v1522_v20 }
 0x15a   : > { %v1164_v38 = vrot.slane %v1163_v51, 2  ;;  %v1527_v42 = vmax.f32 %v1523_v55, %v1525_v31 }
 0x15c   : > { %v1165_v47 = vmax.f32 %v1163_v51, %v1164_v38  ;;  %v1528_v48 = vmax.f32 %v1526_v28, %v1527_v42 }
 0x15e   : > { %v1166_v49 = vrot.slane %v1165_v47, 1  ;;  %v1529_v50 = vrot.slane %v1528_v48, 4 }
 0x160   : > { %v1167_v1 = vmax.f32 %v1165_v47, %v1166_v49  ;;  %v1530_v3 = vmax.f32 %v1528_v48, %v1529_v50 }
 0x162   : > { %v1531_v15 = vrot.slane %v1530_v3, 2  ;;  %v1169_v4 = vmax.f32 %v1168_v63, %v1167_v1 }
 0x164   : > { %v1532_v16 = vmax.f32 %v1530_v3, %v1531_v15  ;;  %1171 = vst.msk [vmem:[#allocation3] sm:$0x1] %vm1170_vm8, %v1169_v4 }
 0x166   : > { %v1533_v8 = vrot.slane %v1532_v16, 1 }
 0x168   : > { %v1534_v5 = vmax.f32 %v1532_v16, %v1533_v8 }
 0x16a   : > { %v1536_v10 = vmax.f32 %v1535_v9, %v1534_v5 }
 0x16c   : > { %1537 = vst.msk [vmem:[#allocation3 + $0x1] sm:$0x1] %vm1170_vm8, %v1536_v10 }
 0x1c5   : > { %v3712_v11 = vpop.f32.mrf.mxu1 }
 0x1c7   : > { %v1672_v58 = vpop.f32.mrf.mxu1 }
 0x1c9   : > { %v3713_v12 = vpop.f32.mrf.mxu1 }
 0x1ca   : > { %v3524_v36 = vpack.c.bf16 %v3713_v12, %v3712_v11 }
 0x1cb   : > { %v1675_v57 = vpop.f32.mrf.mxu1 }
 0x1cc   : > { %3556 = vst [vmem:[#allocation2 + $0x8] sm:$0xff] %v3524_v36   ;;  %v3519_v37 = vpack.c.bf16 %v1675_v57, %v1672_v58 }
 0x1cd   : > { %v3716_v6 = vpop.f32.mrf.mxu1 }
 0x1ce   : > { %3520 = vst [vmem:[#allocation2] sm:$0xff] %v3519_v37  }
 0x1cf   : > { %v1688_v44 = vpop.f32.mrf.mxu1 }
 0x1d1   : > { %v3717_v13 = vpop.f32.mrf.mxu1 }
 0x1d2   : > { %v3534_v2 = vpack.c.bf16 %v3717_v13, %v3716_v6 }
 0x1d3   : > { %v1691_v39 = vpop.f32.mrf.mxu1 }
 0x1d4   : > { %3558 = vst [vmem:[#allocation2 + $0x18] sm:$0xff] %v3534_v2   ;;  %v3529_v40 = vpack.c.bf16 %v1691_v39, %v1688_v44 }
 0x1d5   : > { %v3720_v14 = vpop.f32.mrf.mxu1 }
 0x1d6   : > { %3557 = vst [vmem:[#allocation2 + $0x10] sm:$0xff] %v3529_v40  }
 0x1d7   : > { %v1704_v33 = vpop.f32.mrf.mxu1 }
 0x1d9   : > { %v3721_v7 = vpop.f32.mrf.mxu1 }
 0x1da   : > { %v3544_v45 = vpack.c.bf16 %v3721_v7, %v3720_v14 }
 0x1db   : > { %v1707_v17 = vpop.f32.mrf.mxu1 }
 0x1dc   : > { %3560 = vst [vmem:[#allocation2 + $0x28] sm:$0xff] %v3544_v45   ;;  %v3539_v32 = vpack.c.bf16 %v1707_v17, %v1704_v33 }
 0x1dd   : > { %v3724_v34 = vpop.f32.mrf.mxu1 }
 0x1de   : > { %3559 = vst [vmem:[#allocation2 + $0x20] sm:$0xff] %v3539_v32  }
 0x1df   : > { %v1720_v46 = vpop.f32.mrf.mxu1 }
 0x1e1   : > { %v3725_v18 = vpop.f32.mrf.mxu1 }
 0x1e2   : > { %v3554_v19 = vpack.c.bf16 %v3725_v18, %v3724_v34 }
 0x1e3   : > { %v1723_v21 = vpop.f32.mrf.mxu1 }
 0x1e4   : > { %3562 = vst [vmem:[#allocation2 + $0x38] sm:$0xff] %v3554_v19   ;;  %v3549_v53 = vpack.c.bf16 %v1723_v21, %v1720_v46 }
 0x1e6   : > { %3561 = vst [vmem:[#allocation2 + $0x30] sm:$0xff] %v3549_v53  }
 0x1f9   : > { %v1573_v54 = vpop.f32.mrf.mxu0 }
 0x1fa   : > { %v1579_v23 = vadd.f32 %v1573_v54, %v1538_v43 }
 0x1fb   : > { %v3700_v52 = vpop.f32.mrf.mxu0 }
 0x1fc   : > { %1581 = vst.msk [vmem:[#allocation4] sm:$0x3] %vm541_vm2, %v1579_v23 }
 0x1fd   : > { %v1576_v59 = vpop.f32.mrf.mxu0 }
 0x1ff   : > { %v3701_v61 = vpop.f32.mrf.mxu0 }
 0x200 PF: > { %p3436_p5 = scmp.ne.s32.totalorder %s3965_s24, 1 }
 0x201   : > { %s5160_s23 = sld [smem:[#allocation10_spill]] (!%p3436_p5)  ;;  %s3987_s27 = smov (!%p3436_p5), 64  }
 0x202   : > { %1820 = sbr.rel (%p3436_p5) target bundleno = 2055 (0x807), region = 100  ;;  %s3988_s24 = smov (!%p3436_p5), 16  }
 0x207   : > { %v3855_v56 = vld [vmem:[#allocation2 + $0x38] sm:$0xff]   ;;  %v2066_v60 = vlaneseq  ;;  %v3856_v62 = vld [vmem:[#allocation2 + $0x30] sm:$0xff]   ;;  %v2064_v24 = vpack.i.b16 %v4104_v0, %v4104_v0  ;;  %v2413_v35 = vshrl.u32 %v4104_v0, 16  ;;  %v3981_v25 = vmov 0   ;;  %v3857_v27 = vld [vmem:[#allocation2 + $0x28] sm:$0xff]  }
 0x208   : > { %3726 = vmatprep.subr.bf16.mxu0 %v3855_v56  ;;  %3854 = vset.pattern.permute.xlu1 %v3981_v25  ;;  %v3858_v29 = vld [vmem:[#allocation2 + $0x20] sm:$0xff]   ;;  %v3859_v22 = vld [vmem:[#allocation2 + $0x18] sm:$0xff]   ;;  %v3860_v55 = vld [vmem:[#allocation2 + $0x10] sm:$0xff]   ;;  %v3982_v15 = vmov 839922192  }
 0x209   : > { %v4551_v41 = vshrl.u32 %v2066_v60, 7  ;;  %3727 = vmatpush3.bf16.msra.mxu0 %v3855_v56  ;;  %3853 = vset.pattern.permute.xlu0 %v3981_v25  ;;  %v2414_v30 = vpack.i.b16 %v2413_v35, %v2413_v35  ;;  %v3863_v20 = vld [vmem:[%s5160_s23] sm:$0xff]   ;;  %v3861_v31 = vld [vmem:[#allocation2 + $0x8] sm:$0xff]   ;;  %v3865_v47 = vld [vmem:[%s5160_s23 + $0x10] sm:$0xff]   ;;  %v2118_v4 = vunpack.c.l.s4 %v3982_v15  ;;  %v3983_v16 = vmov 1985246804  }
 0x20a   : > { %3728 = vmatprep.subr.bf16.mxu0 %v3856_v62  ;;  %3742 = vmatprep.mubr.bf16.mxu0 %v3863_v20  ;;  %v3862_v38 = vld [vmem:[#allocation2] sm:$0xff]   ;;  %v3864_v42 = vld [vmem:[%s5160_s23 + $0x8] sm:$0xff]   ;;  %v3866_v49 = vld [vmem:[%s5160_s23 + $0x18] sm:$0xff]   ;;  %v2125_v8 = vunpack.c.l.s4 %v3983_v16 }
 0x20b   : > { %v4557_v26 = vsub.s32 0, %v4551_v41  ;;  %v2817_v48 = vld [vmem:[%s5114_s3] sm:$0x3]  ;;  %v3868_v63 = vld [vmem:[%s5160_s23 + $0x28] sm:$0xff]   ;;  %v3869_v1 = vld [vmem:[%s5160_s23 + $0x30] sm:$0xff]   ;;  %v2119_v9 = vunpack.c.0.s8 %v2118_v4 }
 0x20c   : > { %v3867_v50 = vld [vmem:[%s5160_s23 + $0x20] sm:$0xff]   ;;  %v3870_v3 = vld [vmem:[%s5160_s23 + $0x38] sm:$0xff]   ;;  %v2126_v5 = vunpack.c.0.s8 %v2125_v8 }
 0x20d   : > { %v2069_v28 = vrot.slane %v2064_v24, %v4557_v26  ;;  %3729 = vmatpush3.bf16.msra.mxu0 %v3856_v62  ;;  %v2419_v51 = vrot.slane %v2414_v30, %v4557_v26  ;;  %v4589_v10 = vsub.s32 %v2119_v9, %v4551_v41 }
 0x20e   : > { %3730 = vmatprep.subr.bf16.mxu0 %v3857_v27  ;;  %v4592_v11 = vsub.s32 %v2126_v5, %v4551_v41 }
 0x20f   : > { %2071 = vbcast.lane.c.b16.xlu0 %v2069_v28, 256  ;;  %2079 = vbcast.lane.c.b16.xlu1 %v2069_v28, 288 }
 0x211   : > { %3731 = vmatpush3.bf16.msra.mxu0 %v3857_v27 }
 0x212   : > { %3732 = vmatprep.subr.bf16.mxu0 %v3858_v29 }
 0x213   : > { %2075 = vbcast.lane.c.b16.xlu0 %v2069_v28, 272  ;;  %2083 = vbcast.lane.c.b16.xlu1 %v2069_v28, 304 }
 0x215   : > { %3733 = vmatpush3.bf16.msra.mxu0 %v3858_v29 }
 0x216   : > { %3734 = vmatprep.subr.bf16.mxu0 %v3859_v22 }
 0x217   : > { %2421 = vbcast.lane.c.b16.xlu0 %v2419_v51, 256  ;;  %2425 = vbcast.lane.c.b16.xlu1 %v2419_v51, 272 }
 0x219   : > { %3735 = vmatpush3.bf16.msra.mxu0 %v3859_v22 }
 0x21a   : > { %3736 = vmatprep.subr.bf16.mxu0 %v3860_v55 }
 0x21b   : > { %2429 = vbcast.lane.c.b16.xlu0 %v2419_v51, 288  ;;  %2433 = vbcast.lane.c.b16.xlu1 %v2419_v51, 304 }
 0x21d   : > { %3737 = vmatpush3.bf16.msra.mxu0 %v3860_v55 }
 0x21e   : > { %3738 = vmatprep.subr.bf16.mxu0 %v3861_v31 }
 0x21f   : > { %2087 = vbcast.lane.c.b16.xlu0 %v2069_v28, 320  ;;  %2091 = vbcast.lane.c.b16.xlu1 %v2069_v28, 336 }
 0x221   : > { %3739 = vmatpush3.bf16.msra.mxu0 %v3861_v31 }
 0x222   : > { %3740 = vmatprep.subr.bf16.mxu0 %v3862_v38 }
 0x223   : > { %2437 = vbcast.lane.c.b16.xlu0 %v2419_v51, 320  ;;  %2441 = vbcast.lane.c.b16.xlu1 %v2419_v51, 336 }
 0x225   : > { %3741 = vmatpush3.bf16.msra.mxu0 %v3862_v38 }
 0x227   : > { %2095 = vbcast.lane.c.b16.xlu0 %v2069_v28, 352  ;;  %2099 = vbcast.lane.c.b16.xlu1 %v2069_v28, 368 }
 0x228   : > { %3743 = vmatmul.mubr.bf16.vlgmr.msra.gmra.mxu0 %v3864_v42 }
 0x229   : > { %3746 = vmatprep.mubr.bf16.mxu0 %v3865_v47 }
 0x22b   : > { %2445 = vbcast.lane.c.b16.xlu0 %v2419_v51, 352  ;;  %2449 = vbcast.lane.c.b16.xlu1 %v2419_v51, 368 }
 0x22f   : > { %2822 = vperm.xlu0 %3853, %v2817_v48  }
 0x230   : > { %3747 = vmatmul.mubr.bf16.gmra.mxu0 %v3866_v49 }
 0x231   : > { %3750 = vmatprep.mubr.bf16.mxu0 %v3867_v50 }
 0x238   : > { %3751 = vmatmul.mubr.bf16.gmra.mxu0 %v3868_v63 }
 0x239   : > { %3754 = vmatprep.mubr.bf16.mxu0 %v3869_v1 }
 0x240   : > { %3755 = vmatmul.mubr.bf16.gmra.mxu0 %v3870_v3 }
 0x281   : > { %v2072_v58 = vpop.permute.xlu0 %2071  ;;  %v2080_v12 = vpop.permute.xlu1 %2079 }
 0x282   : > { %vm2101_vm2 = vcmp.gt.bf16.partialorder %v2072_v58, 0  ;;  %vm2103_vm3 = vcmp.gt.bf16.partialorder %v2080_v12, 0 }
 0x283   : > { %v2109_v36 = vsel %vm2101_vm2, 65537, %v3981_v25  ;;  %v2111_v6 = vsel %vm2103_vm3, 65537, %v3981_v25 }
 0x284   : > { %v2123_v57 = vrot.slane %v2109_v36, %v4589_v10  ;;  %v2130_v37 = vrot.slane %v2109_v36, %v4592_v11  ;;  %v2151_v13 = vrot.slane %v2111_v6, %v4589_v10  ;;  %v2158_v2 = vrot.slane %v2111_v6, %v4592_v11 }
 0x285   : > { %v2076_v44 = vpop.permute.xlu0 %2075  ;;  %v2084_v39 = vpop.permute.xlu1 %2083 }
 0x286   : > { %vm2229_vm9 = vcmp.ne.s16.totalorder %v2123_v57, 0  ;;  %vm2230_vm5 = vcmp.ne.s16.totalorder %v2130_v37, 0  ;;  %vm2102_vm10 = vcmp.gt.bf16.partialorder %v2076_v44, 0  ;;  %vm2233_vm11 = vcmp.ne.s16.totalorder %v2151_v13, 0 }
 0x287   : > { %v2110_v40 = vsel %vm2102_vm10, 65537, %v3981_v25  ;;  %vm2234_vm12 = vcmp.ne.s16.totalorder %v2158_v2, 0  ;;  %v2245_v14 = vsel %vm2229_vm9, 65537, %v3981_v25  ;;  %vm2104_vm14 = vcmp.gt.bf16.partialorder %v2084_v39, 0 }
 0x288   : > { %v2137_v33 = vrot.slane %v2110_v40, %v4589_v10  ;;  %v2144_v7 = vrot.slane %v2110_v40, %v4592_v11  ;;  %v2261_v45 = vunpack.c.l.b16 %v2245_v14  ;;  %v2112_v17 = vsel %vm2104_vm14, 65537, %v3981_v25 }
 0x289   : > { %v2246_v32 = vsel %vm2230_vm5, 65537, %v3981_v25  ;;  %v2422_v34 = vpop.permute.xlu0 %2421  ;;  %v2249_v46 = vsel %vm2233_vm11, 65537, %v3981_v25  ;;  %v2250_v18 = vsel %vm2234_vm12, 65537, %v3981_v25  ;;  %v2165_v19 = vrot.slane %v2112_v17, %v4589_v10  ;;  %v2426_v61 = vpop.permute.xlu1 %2425 }
 0x28a   : > { %vm2231_vm15 = vcmp.ne.s16.totalorder %v2137_v33, 0  ;;  %vm2232_vm0 = vcmp.ne.s16.totalorder %v2144_v7, 0  ;;  %vm2277_vm1 = vcmp.ne.s32.totalorder %v2261_v45, 0  ;;  %v2172_v53 = vrot.slane %v2112_v17, %v4592_v11 }
 0x28b   : > { %v2293_v21 = vsel %vm2277_vm1, 1, %v3981_v25  ;;  %v2262_v43 = vunpack.c.l.b16 %v2246_v32  ;;  %v2247_v54 = vsel %vm2231_vm15, 65537, %v3981_v25  ;;  %vm4612_vm13 = vcmp.ne.s16.totalorder %v2165_v19, 0 }
 0x28c   : > { %2310 = vperm.xlu1 %3854, %v2293_v21   ;;  %v2263_v52 = vunpack.c.l.b16 %v2247_v54  ;;  %vm2451_vm4 = vcmp.gt.bf16.partialorder %v2422_v34, 0  ;;  %v2248_v59 = vsel %vm2232_vm0, 65537, %v3981_v25  ;;  %vm4617_vm6 = vcmp.ne.s16.totalorder %v2172_v53, 0 }
 0x28d   : > { %vm2278_vm7 = vcmp.ne.s32.totalorder %v2262_v43, 0  ;;  %v2459_v60 = vsel %vm2451_vm4, 65537, %v3981_v25  ;;  %v2264_v62 = vunpack.c.l.b16 %v2248_v59  ;;  %v2265_v29 = vunpack.c.l.b16 %v2249_v46  ;;  %v2430_v30 = vpop.permute.xlu0 %2429  ;;  %v2434_v3 = vpop.permute.xlu1 %2433 }
 0x28e   : > { %v2294_v24 = vsel %vm2278_vm7, 1, %v3981_v25  ;;  %vm2279_vm8 = vcmp.ne.s32.totalorder %v2263_v52, 0  ;;  %v2473_v35 = vrot.slane %v2459_v60, %v4589_v10  ;;  %v2480_v27 = vrot.slane %v2459_v60, %v4592_v11 }
 0x28f   : > { %v2295_v28 = vsel %vm2279_vm8, 1, %v3981_v25  ;;  %vm2280_vm2 = vcmp.ne.s32.totalorder %v2264_v62, 0  ;;  %vm2452_vm3 = vcmp.gt.bf16.partialorder %v2426_v61, 0  ;;  %vm2281_vm10 = vcmp.ne.s32.totalorder %v2265_v29, 0 }
 0x290   : > { %2313 = vperm.xlu1 %3854, %v2294_v24   ;;  %2316 = vperm.xlu0 %3853, %v2295_v28   ;;  %vm4626_vm9 = vcmp.ne.s16.totalorder %v2473_v35, 0  ;;  %vm4630_vm5 = vcmp.ne.s16.totalorder %v2480_v27, 0  ;;  %v2296_v51 = vsel %vm2280_vm2, 1, %v3981_v25  ;;  %v2460_v55 = vsel %vm2452_vm3, 65537, %v3981_v25 }
 0x291   : > { %v2487_v31 = vrot.slane %v2460_v55, %v4589_v10  ;;  %v2494_v38 = vrot.slane %v2460_v55, %v4592_v11  ;;  %v2266_v42 = vunpack.c.l.b16 %v2250_v18  ;;  %v2297_v47 = vsel %vm2281_vm10, 1, %v3981_v25  ;;  %v2088_v57 = vpop.permute.xlu0 %2087  ;;  %v2092_v34 = vpop.permute.xlu1 %2091 }
 0x292   : > { %v2251_v48 = vsel %vm4612_vm13, 65537, %v3981_v25  ;;  %vm2453_vm11 = vcmp.gt.bf16.partialorder %v2430_v30, 0  ;;  %v2252_v49 = vsel %vm4617_vm6, 65537, %v3981_v25  ;;  %v2595_v8 = vsel %vm4626_vm9, 65537, %v3981_v25 }
 0x293   : > { %vm4645_vm12 = vcmp.ne.s16.totalorder %v2487_v31, 0  ;;  %vm4649_vm14 = vcmp.ne.s16.totalorder %v2494_v38, 0  ;;  %vm2282_vm15 = vcmp.ne.s32.totalorder %v2266_v42, 0  ;;  %v2267_v1 = vunpack.c.l.b16 %v2251_v48 }
 0x294   : > { %2319 = vperm.xlu1 %3854, %v2296_v51   ;;  %2322 = vperm.xlu0 %3853, %v2297_v47   ;;  %v2298_v15 = vsel %vm2282_vm15, 1, %v3981_v25  ;;  %v2461_v4 = vsel %vm2453_vm11, 65537, %v3981_v25  ;;  %v2268_v16 = vunpack.c.l.b16 %v2252_v49  ;;  %v2611_v58 = vunpack.c.l.b16 %v2595_v8 }
 0x295   : > { %vm2283_vm0 = vcmp.ne.s32.totalorder %v2267_v1, 0  ;;  %v2501_v9 = vrot.slane %v2461_v4, %v4589_v10  ;;  %v2508_v5 = vrot.slane %v2461_v4, %v4592_v11  ;;  %vm2454_vm13 = vcmp.gt.bf16.partialorder %v2434_v3, 0  ;;  %v2438_v52 = vpop.permute.xlu0 %2437  ;;  %v2442_v22 = vpop.permute.xlu1 %2441 }
 0x296   : > { %v2299_v12 = vsel %vm2283_vm0, 1, %v3981_v25  ;;  %vm2284_vm1 = vcmp.ne.s32.totalorder %v2268_v16, 0  ;;  %v2596_v36 = vsel %vm4630_vm5, 65537, %v3981_v25  ;;  %vm2627_vm7 = vcmp.ne.s32.totalorder %v2611_v58, 0 }
 0x297   : > { %vm4664_vm4 = vcmp.ne.s16.totalorder %v2501_v9, 0  ;;  %vm4668_vm6 = vcmp.ne.s16.totalorder %v2508_v5, 0  ;;  %v2300_v44 = vsel %vm2284_vm1, 1, %v3981_v25  ;;  %v2643_v13 = vsel %vm2627_vm7, 1, %v3981_v25 }
 0x298   : > { %2325 = vperm.xlu1 %3854, %v2298_v15   ;;  %2328 = vperm.xlu0 %3853, %v2299_v12   ;;  %v2462_v2 = vsel %vm2454_vm13, 65537, %v3981_v25  ;;  %v2612_v39 = vunpack.c.l.b16 %v2596_v36  ;;  %v2597_v40 = vsel %vm4645_vm12, 65537, %v3981_v25  ;;  %vm2105_vm8 = vcmp.gt.bf16.partialorder %v2088_v57, 0 }
 0x299   : > { %v2515_v14 = vrot.slane %v2462_v2, %v4589_v10  ;;  %v2522_v33 = vrot.slane %v2462_v2, %v4592_v11  ;;  %v2613_v7 = vunpack.c.l.b16 %v2597_v40  ;;  %v2113_v45 = vsel %vm2105_vm8, 65537, %v3981_v25  ;;  %v2096_v63 = vpop.permute.xlu0 %2095  ;;  %v2100_v37 = vpop.permute.xlu1 %2099 }
 0x29a   : > { %vm2628_vm2 = vcmp.ne.s32.totalorder %v2612_v39, 0  ;;  %v2598_v17 = vsel %vm4649_vm14, 65537, %v3981_v25  ;;  %v2599_v32 = vsel %vm4664_vm4, 65537, %v3981_v25  ;;  %v2179_v19 = vrot.slane %v2113_v45, %v4589_v10 }
 0x29b   : > { %vm2585_vm3 = vcmp.ne.s16.totalorder %v2515_v14, 0  ;;  %v2644_v46 = vsel %vm2628_vm2, 1, %v3981_v25  ;;  %vm2629_vm9 = vcmp.ne.s32.totalorder %v2613_v7, 0  ;;  %v2186_v21 = vrot.slane %v2113_v45, %v4592_v11 }
 0x29c   : > { %2331 = vperm.xlu1 %3854, %v2300_v44   ;;  %2660 = vperm.xlu0 %3853, %v2643_v13   ;;  %v2645_v18 = vsel %vm2629_vm9, 1, %v3981_v25  ;;  %v2614_v53 = vunpack.c.l.b16 %v2598_v17  ;;  %v2615_v43 = vunpack.c.l.b16 %v2599_v32  ;;  %vm2106_vm5 = vcmp.gt.bf16.partialorder %v2092_v34, 0 }
 0x29d   : > { %v2600_v54 = vsel %vm4668_vm6, 65537, %v3981_v25  ;;  %v2601_v23 = vsel %vm2585_vm3, 65537, %v3981_v25  ;;  %vm4695_vm10 = vcmp.ne.s16.totalorder %v2522_v33, 0  ;;  %v2114_v61 = vsel %vm2106_vm5, 65537, %v3981_v25  ;;  %v2446_v7 = vpop.permute.xlu0 %2445 }
 0x29e   : > { %vm2630_vm11 = vcmp.ne.s32.totalorder %v2614_v53, 0  ;;  %vm4700_vm12 = vcmp.ne.s16.totalorder %v2179_v19, 0  ;;  %vm2631_vm14 = vcmp.ne.s32.totalorder %v2615_v43, 0  ;;  %v2193_v60 = vrot.slane %v2114_v61, %v4589_v10 }
 0x29f   : > { %v2200_v62 = vrot.slane %v2114_v61, %v4592_v11  ;;  %vm4706_vm15 = vcmp.ne.s16.totalorder %v2186_v21, 0  ;;  %v2616_v35 = vunpack.c.l.b16 %v2600_v54  ;;  %v2617_v27 = vunpack.c.l.b16 %v2601_v23  ;;  %v2450_v23 = vpop.permute.xlu1 %2449 }
 0x2a0   : > { %2663 = vperm.xlu1 %3854, %v2644_v46   ;;  %2666 = vperm.xlu0 %3853, %v2645_v18   ;;  %vm2455_vm0 = vcmp.gt.bf16.partialorder %v2438_v52, 0  ;;  %v2646_v28 = vsel %vm2630_vm11, 1, %v3981_v25  ;;  %v2647_v29 = vsel %vm2631_vm14, 1, %v3981_v25  ;;  %v2602_v20 = vsel %vm4695_vm10, 65537, %v3981_v25 }
 0x2a1   : > { %v2463_v30 = vsel %vm2455_vm0, 65537, %v3981_v25  ;;  %vm4716_vm1 = vcmp.ne.s16.totalorder %v2193_v60, 0  ;;  %vm2632_vm13 = vcmp.ne.s32.totalorder %v2616_v35, 0  ;;  %vm2633_vm4 = vcmp.ne.s32.totalorder %v2617_v27, 0 }
 0x2a2   : > { %v2529_v55 = vrot.slane %v2463_v30, %v4589_v10  ;;  %vm4721_vm6 = vcmp.ne.s16.totalorder %v2200_v62, 0  ;;  %v2536_v38 = vrot.slane %v2463_v30, %v4592_v11  ;;  %v2618_v42 = vunpack.c.l.b16 %v2602_v20 }
 0x2a3   : > { %v2253_v47 = vsel %vm4700_vm12, 65537, %v3981_v25  ;;  %v2648_v48 = vsel %vm2632_vm13, 1, %v3981_v25  ;;  %v2649_v49 = vsel %vm2633_vm4, 1, %v3981_v25  ;;  %vm2456_vm7 = vcmp.gt.bf16.partialorder %v2442_v22, 0 }
 0x2a4   : > { %2669 = vperm.xlu1 %3854, %v2646_v28   ;;  %2672 = vperm.xlu0 %3853, %v2647_v29   ;;  %v2269_v50 = vunpack.c.l.b16 %v2253_v47  ;;  %vm2634_vm8 = vcmp.ne.s32.totalorder %v2618_v42, 0  ;;  %v2464_v1 = vsel %vm2456_vm7, 65537, %v3981_v25  ;;  %v2254_v3 = vsel %vm4706_vm15, 65537, %v3981_v25 }
 0x2a5   : > { %v2255_v15 = vsel %vm4716_vm1, 65537, %v3981_v25  ;;  %vm4738_vm2 = vcmp.ne.s16.totalorder %v2529_v55, 0  ;;  %v2543_v16 = vrot.slane %v2464_v1, %v4589_v10  ;;  %v2550_v8 = vrot.slane %v2464_v1, %v4592_v11 }
 0x2a6   : > { %vm2285_vm3 = vcmp.ne.s32.totalorder %v2269_v50, 0  ;;  %v2270_v9 = vunpack.c.l.b16 %v2254_v3  ;;  %v2271_v5 = vunpack.c.l.b16 %v2255_v15  ;;  %vm2107_vm9 = vcmp.gt.bf16.partialorder %v2096_v63, 0 }
 0x2a7   : > { %vm4744_vm5 = vcmp.ne.s16.totalorder %v2536_v38, 0  ;;  %v2650_v12 = vsel %vm2634_vm8, 1, %v3981_v25  ;;  %v2115_v36 = vsel %vm2107_vm9, 65537, %v3981_v25  ;;  %v2256_v57 = vsel %vm4721_vm6, 65537, %v3981_v25 }
 0x2a8   : > { %2675 = vperm.xlu1 %3854, %v2648_v48   ;;  %2678 = vperm.xlu0 %3853, %v2649_v49   ;;  %v2301_v6 = vsel %vm2285_vm3, 1, %v3981_v25  ;;  %vm4754_vm10 = vcmp.ne.s16.totalorder %v2543_v16, 0  ;;  %vm2286_vm11 = vcmp.ne.s32.totalorder %v2270_v9, 0  ;;  %v2207_v13 = vrot.slane %v2115_v36, %v4589_v10 }
 0x2a9   : > { %vm2287_vm12 = vcmp.ne.s32.totalorder %v2271_v5, 0  ;;  %v2272_v2 = vunpack.c.l.b16 %v2256_v57  ;;  %v2603_v39 = vsel %vm4738_vm2, 65537, %v3981_v25  ;;  %vm4762_vm14 = vcmp.ne.s16.totalorder %v2550_v8, 0 }
 0x2aa   : > { %v2214_v14 = vrot.slane %v2115_v36, %v4592_v11  ;;  %v2619_v33 = vunpack.c.l.b16 %v2603_v39  ;;  %vm2108_vm15 = vcmp.gt.bf16.partialorder %v2100_v37, 0  ;;  %v2302_v45 = vsel %vm2286_vm11, 1, %v3981_v25  ;;  %v4823_v18 = vpop.permute.xlu0 %2822 }
 0x2ab   : > { %v2116_v17 = vsel %vm2108_vm15, 65537, %v3981_v25  ;;  %v2604_v32 = vsel %vm4744_vm5, 65537, %v3981_v25  ;;  %v2605_v34 = vsel %vm4754_vm10, 65537, %v3981_v25  ;;  %v2303_v46 = vsel %vm2287_vm12, 1, %v3981_v25 }
 0x2ac   : > { %2681 = vperm.xlu1 %3854, %v2650_v12   ;;  %2334 = vperm.xlu0 %3853, %v2301_v6   ;;  %vm4776_vm0 = vcmp.ne.s16.totalorder %v2207_v13, 0  ;;  %vm2288_vm1 = vcmp.ne.s32.totalorder %v2272_v2, 0  ;;  %v2221_v19 = vrot.slane %v2116_v17, %v4589_v10  ;;  %vm2635_vm13 = vcmp.ne.s32.totalorder %v2619_v33, 0 }
 0x2ad   : > { %v2620_v21 = vunpack.c.l.b16 %v2604_v32  ;;  %v2621_v53 = vunpack.c.l.b16 %v2605_v34  ;;  %vm2457_vm4 = vcmp.gt.bf16.partialorder %v2446_v7, 0  ;;  %v2606_v54 = vsel %vm4762_vm14, 65537, %v3981_v25 }
 0x2ae   : > { %v2465_v43 = vsel %vm2457_vm4, 65537, %v3981_v25  ;;  %vm2242_vm6 = vcmp.ne.s16.totalorder %v2214_v14, 0  ;;  %v2228_v52 = vrot.slane %v2116_v17, %v4592_v11  ;;  %vm2243_vm7 = vcmp.ne.s16.totalorder %v2221_v19, 0 }
 0x2af   : > { %v2557_v59 = vrot.slane %v2465_v43, %v4589_v10  ;;  %v2304_v61 = vsel %vm2288_vm1, 1, %v3981_v25  ;;  %v2651_v56 = vsel %vm2635_vm13, 1, %v3981_v25  ;;  %vm2636_vm8 = vcmp.ne.s32.totalorder %v2620_v21, 0 }
 0x2b0   : > { %2337 = vperm.xlu1 %3854, %v2302_v45   ;;  %2340 = vperm.xlu0 %3853, %v2303_v46   ;;  %v2257_v60 = vsel %vm4776_vm0, 65537, %v3981_v25  ;;  %vm2637_vm2 = vcmp.ne.s32.totalorder %v2621_v53, 0  ;;  %v2622_v62 = vunpack.c.l.b16 %v2606_v54  ;;  %vm2458_vm3 = vcmp.gt.bf16.partialorder %v2450_v23, 0 }
 0x2b1   : > { %v2273_v24 = vunpack.c.l.b16 %v2257_v60  ;;  %v2466_v35 = vsel %vm2458_vm3, 65537, %v3981_v25  ;;  %v2258_v27 = vsel %vm2242_vm6, 65537, %v3981_v25  ;;  %v2259_v28 = vsel %vm2243_vm7, 65537, %v3981_v25 }
 0x2b2   : > { %vm2244_vm9 = vcmp.ne.s16.totalorder %v2228_v52, 0  ;;  %v2564_v29 = vrot.slane %v2465_v43, %v4592_v11  ;;  %vm2591_vm5 = vcmp.ne.s16.totalorder %v2557_v59, 0  ;;  %v2571_v30 = vrot.slane %v2466_v35, %v4589_v10 }
 0x2b3   : > { %v2652_v20 = vsel %vm2636_vm8, 1, %v3981_v25  ;;  %v2653_v22 = vsel %vm2637_vm2, 1, %v3981_v25  ;;  %vm2638_vm10 = vcmp.ne.s32.totalorder %v2622_v62, 0  ;;  %vm2289_vm11 = vcmp.ne.s32.totalorder %v2273_v24, 0 }
 0x2b4   : > { %2343 = vperm.xlu1 %3854, %v2304_v61   ;;  %2684 = vperm.xlu0 %3853, %v2651_v56   ;;  %v2274_v51 = vunpack.c.l.b16 %v2258_v27  ;;  %v2275_v55 = vunpack.c.l.b16 %v2259_v28  ;;  %v2260_v31 = vsel %vm2244_vm9, 65537, %v3981_v25  ;;  %v2607_v38 = vsel %vm2591_vm5, 65537, %v3981_v25 }
 0x2b5   : > { %vm2592_vm12 = vcmp.ne.s16.totalorder %v2564_v29, 0  ;;  %v2578_v42 = vrot.slane %v2466_v35, %v4592_v11  ;;  %vm2593_vm14 = vcmp.ne.s16.totalorder %v2571_v30, 0  ;;  %v2654_v10 = vsel %vm2638_vm10, 1, %v3981_v25 }
 0x2b6   : > { %v2305_v47 = vsel %vm2289_vm11, 1, %v3981_v25  ;;  %vm2290_vm15 = vcmp.ne.s32.totalorder %v2274_v51, 0  ;;  %vm2291_vm0 = vcmp.ne.s32.totalorder %v2275_v55, 0  ;;  %v2276_v48 = vunpack.c.l.b16 %v2260_v31 }
 0x2b7   : > { %v2623_v49 = vunpack.c.l.b16 %v2607_v38  ;;  %v2608_v50 = vsel %vm2592_vm12, 65537, %v3981_v25  ;;  %v2609_v63 = vsel %vm2593_vm14, 65537, %v3981_v25  ;;  %vm2594_vm1 = vcmp.ne.s16.totalorder %v2578_v42, 0 }
 0x2b8   : > { %2687 = vperm.xlu1 %3854, %v2652_v20   ;;  %2690 = vperm.xlu0 %3853, %v2653_v22   ;;  %v3984_v1 = vmov 0.0   ;;  %v2306_v11 = vsel %vm2290_vm15, 1, %v3981_v25  ;;  %v2307_v3 = vsel %vm2291_vm0, 1, %v3981_v25  ;;  %vm3985_vm13 = vmmov 0  }
 0x2b9   : > { %1826 = vst [vmem:[#allocation6] sm:$0x3] %v3984_v1  ;;  %3758 = vmatprep.subr.bf16.mxu1 %v3984_v1  ;;  %3774 = vmatprep.mubr.msk.bf16.mxu1 %vm3985_vm13, %v3984_v1  ;;  %vm2292_vm4 = vcmp.ne.s32.totalorder %v2276_v48, 0  ;;  %vm2639_vm6 = vcmp.ne.s32.totalorder %v2623_v49, 0  ;;  %v2624_v15 = vunpack.c.l.b16 %v2608_v50  ;;  %v2625_v4 = vunpack.c.l.b16 %v2609_v63 }
 0x2ba   : > { %v2610_v16 = vsel %vm2594_vm1, 65537, %v3981_v25  ;;  %v2308_v8 = vsel %vm2292_vm4, 1, %v3981_v25  ;;  %v2655_v9 = vsel %vm2639_vm6, 1, %v3981_v25  ;;  %v3986_v5 = vmov -1e+30  }
 0x2bb   : > { %1825 = vst [vmem:[#allocation5] sm:$0x3] %v3986_v5  ;;  %vm2640_vm7 = vcmp.ne.s32.totalorder %v2624_v15, 0  ;;  %vm2641_vm8 = vcmp.ne.s32.totalorder %v2625_v4, 0  ;;  %v2626_v58 = vunpack.c.l.b16 %v2610_v16 }
 0x2bc   : > { %2693 = vperm.xlu1 %3854, %v2654_v10   ;;  %2346 = vperm.xlu0 %3853, %v2305_v47   ;;  %v2656_v12 = vsel %vm2640_vm7, 1, %v3981_v25  ;;  %v2657_v36 = vsel %vm2641_vm8, 1, %v3981_v25 }
 0x2bd   : > { %vm2642_vm2 = vcmp.ne.s32.totalorder %v2626_v58, 0 }
 0x2be   : > { %v2658_v57 = vsel %vm2642_vm2, 1, %v3981_v25  ;;  %v3437_v25 = vld [vmem:[%s5117_s6] ss:$0 sm:$0xff] }
 0x2c0   : > { %2349 = vperm.xlu1 %3854, %v2306_v11   ;;  %2352 = vperm.xlu0 %3853, %v2307_v3  }
 0x2c4   : > { %2355 = vperm.xlu1 %3854, %v2308_v8   ;;  %2696 = vperm.xlu0 %3853, %v2655_v9  }
 0x2c8   : > { %2699 = vperm.xlu1 %3854, %v2656_v12   ;;  %2702 = vperm.xlu0 %3853, %v2657_v36  }
 0x2cc   : > { %2705 = vperm.xlu1 %3854, %v2658_v57  }
 0x2e8   : > { %v3744_v37 = vpop.f32.mrf.mxu0 }
 0x2e9   : > { %v2009_v11 = vadd.f32 %v3744_v37, %v3437_v25 }
 0x2ea   : > { %v4818_v6 = vpop.f32.mrf.mxu0 }
 0x2eb   : > { %v2001_v8 = vadd.f32 %v3437_v25, %v4818_v6 }
 0x2ec   : > { %v3745_v44 = vpop.f32.mrf.mxu0 }
 0x2ed   : > { %v2012_v50 = vadd.f32 %v3745_v44, %v3437_v25 }
 0x2ee   : > { %v2003_v13 = vpop.f32.mrf.mxu0 }
 0x2ef   : > { %v2004_v4 = vadd.f32 %v3437_v25, %v2003_v13  ;;  %v2765_v16 = vpack.c.bf16 %v2012_v50, %v2009_v11 }
 0x2f0   : > { %v3748_v2 = vpop.f32.mrf.mxu0 }
 0x2f1   : > { %v4862_v55 = vadd.f32 %v3748_v2, %v3437_v25  ;;  %v2764_v58 = vpack.c.bf16 %v2004_v4, %v2001_v8 }
 0x2f2   : > { %v2016_v39 = vpop.f32.mrf.mxu0 }
 0x2f3   : > { %v4869_v47 = vadd.f32 %v3437_v25, %v2016_v39 }
 0x2f4   : > { %v3749_v40 = vpop.f32.mrf.mxu0 }
 0x2f5   : > { %v4858_v22 = vadd.f32 %v3749_v40, %v3437_v25 }
 0x2f6   : > { %v2019_v14 = vpop.f32.mrf.mxu0 }
 0x2f7   : > { %v4865_v42 = vadd.f32 %v3437_v25, %v2019_v14  ;;  %v2767_v10 = vpack.c.bf16 %v4858_v22, %v4862_v55 }
 0x2f8   : > { %v3752_v33 = vpop.f32.mrf.mxu0 }
 0x2f9   : > { %v4846_v62 = vadd.f32 %v3752_v33, %v3437_v25  ;;  %v2766_v63 = vpack.c.bf16 %v4865_v42, %v4869_v47 }
 0x2fa   : > { %v2032_v7 = vpop.f32.mrf.mxu0 }
 0x2fb   : > { %v4855_v29 = vadd.f32 %v3437_v25, %v2032_v7 }
 0x2fc   : > { %v3753_v45 = vpop.f32.mrf.mxu0 }
 0x2fd   : > { %v4842_v56 = vadd.f32 %v3753_v45, %v3437_v25 }
 0x2fe   : > { %v2035_v17 = vpop.f32.mrf.mxu0 }
 0x2ff   : > { %v4851_v27 = vadd.f32 %v3437_v25, %v2035_v17  ;;  %v2769_v28 = vpack.c.bf16 %v4842_v56, %v4846_v62 }
 0x300   : > { %v3756_v32 = vpop.f32.mrf.mxu0 }
 0x301   : > { %v4825_v19 = vadd.f32 %v3756_v32, %v3437_v25  ;;  %v2768_v51 = vpack.c.bf16 %v4851_v27, %v4855_v29 }
 0x302   : > { %v2048_v34 = vpop.f32.mrf.mxu0 }
 0x303   : > { %v4835_v52 = vadd.f32 %v3437_v25, %v2048_v34 }
 0x304   : > { %v3757_v46 = vpop.f32.mrf.mxu0 }
 0x305   : > { %v4827_v21 = vadd.f32 %v3757_v46, %v3437_v25 }
 0x306   : > { %v2051_v43 = vpop.f32.mrf.mxu0 }
 0x307   : > { %v4829_v53 = vpop.permute.xlu1 %2310  ;;  %v4831_v54 = vadd.f32 %v3437_v25, %v2051_v43  ;;  %v2771_v23 = vpack.c.bf16 %v4827_v21, %v4825_v19 }
 0x308   : > { %vm2357_vm3 = vcmp.eq.s32.totalorder %v4829_v53, 1 }
 0x309   : > { %3759 = vmatpush3.bf16.msra.mxu1 %v2771_v23  ;;  %v2770_v60 = vpack.c.bf16 %v4831_v54, %v4835_v52 }
 0x30a   : > { %3760 = vmatprep.subr.bf16.mxu1 %v3984_v1 }
 0x30b   : > { %v4837_v59 = vpop.permute.xlu1 %2313  ;;  %v4839_v61 = vpop.permute.xlu0 %2316 }
 0x30c   : > { %vm2358_vm5 = vcmp.eq.s32.totalorder %v4837_v59, 1  ;;  %vm2359_vm12 = vcmp.eq.s32.totalorder %v4839_v61, 1 }
 0x30d   : > { %3761 = vmatpush3.bf16.msra.mxu1 %v2770_v60  ;;  %v2374_v40 = vsel %vm2358_vm5, %v2004_v4, -1e+30  ;;  %v2375_v7 = vsel %vm2359_vm12, %v2009_v11, -1e+30 }
 0x30e   : > { %3762 = vmatprep.subr.bf16.mxu1 %v3984_v1 }
 0x30f   : > { %v4848_v24 = vpop.permute.xlu1 %2319  ;;  %v2323_v35 = vpop.permute.xlu0 %2322 }
 0x310   : > { %vm2361_vm9 = vcmp.eq.s32.totalorder %v2323_v35, 1  ;;  %vm2360_vm14 = vcmp.eq.s32.totalorder %v4848_v24, 1 }
 0x311   : > { %3763 = vmatpush3.bf16.msra.mxu1 %v2769_v28  ;;  %v2377_v39 = vsel %vm2361_vm9, %v4869_v47, -1e+30  ;;  %v2376_v45 = vsel %vm2360_vm14, %v2012_v50, -1e+30 }
 0x312   : > { %3764 = vmatprep.subr.bf16.mxu1 %v3984_v1 }
 0x313   : > { %v2326_v30 = vpop.permute.xlu1 %2325  ;;  %v2329_v20 = vpop.permute.xlu0 %2328 }
 0x314   : > { %vm2362_vm10 = vcmp.eq.s32.totalorder %v2326_v30, 1  ;;  %vm2363_vm11 = vcmp.eq.s32.totalorder %v2329_v20, 1 }
 0x315   : > { %3765 = vmatpush3.bf16.msra.mxu1 %v2768_v51  ;;  %v2378_v14 = vsel %vm2362_vm10, %v4865_v42, -1e+30  ;;  %v2379_v33 = vsel %vm2363_vm11, %v4862_v55, -1e+30 }
 0x316   : > { %3766 = vmatprep.subr.bf16.mxu1 %v3984_v1  ;;  %v2390_v46 = vmax.f32 %v2374_v40, %v2378_v14  ;;  %v2391_v53 = vmax.f32 %v2375_v7, %v2379_v33 }
 0x317   : > { %v2332_v31 = vpop.permute.xlu1 %2331  ;;  %v2661_v38 = vpop.permute.xlu0 %2660 }
 0x318   : > { %vm2364_vm15 = vcmp.eq.s32.totalorder %v2332_v31, 1  ;;  %vm2707_vm0 = vcmp.eq.s32.totalorder %v2661_v38, 1 }
 0x319   : > { %3767 = vmatpush3.bf16.msra.mxu1 %v2767_v10  ;;  %v2380_v32 = vsel %vm2364_vm15, %v4858_v22, -1e+30  ;;  %v2723_v43 = vsel %vm2707_vm0, %v2001_v8, -1e+30 }
 0x31a   : > { %3768 = vmatprep.subr.bf16.mxu1 %v3984_v1  ;;  %v2392_v59 = vmax.f32 %v2376_v45, %v2380_v32 }
 0x31b   : > { %v2664_v48 = vpop.permute.xlu1 %2663  ;;  %v2667_v49 = vpop.permute.xlu0 %2666 }
 0x31c   : > { %vm2708_vm1 = vcmp.eq.s32.totalorder %v2664_v48, 1  ;;  %vm2709_vm4 = vcmp.eq.s32.totalorder %v2667_v49, 1 }
 0x31d   : > { %3769 = vmatpush3.bf16.msra.mxu1 %v2766_v63  ;;  %v2724_v23 = vsel %vm2708_vm1, %v2004_v4, -1e+30  ;;  %v2725_v61 = vsel %vm2709_vm4, %v2009_v11, -1e+30 }
 0x31e   : > { %3770 = vmatprep.subr.bf16.mxu1 %v3984_v1 }
 0x31f   : > { %v2670_v3 = vpop.permute.xlu1 %2669  ;;  %v2673_v15 = vpop.permute.xlu0 %2672 }
 0x320   : > { %vm2710_vm7 = vcmp.eq.s32.totalorder %v2670_v3, 1  ;;  %vm2711_vm2 = vcmp.eq.s32.totalorder %v2673_v15, 1 }
 0x321   : > { %3771 = vmatpush3.bf16.msra.mxu1 %v2765_v16  ;;  %v2726_v24 = vsel %vm2710_vm7, %v2012_v50, -1e+30  ;;  %v2727_v20 = vsel %vm2711_vm2, %v4869_v47, -1e+30 }
 0x322   : > { %3772 = vmatprep.subr.bf16.mxu1 %v3984_v1 }
 0x323   : > { %v4876_v9 = vpop.permute.xlu1 %2675  ;;  %v4878_v5 = vpop.permute.xlu0 %2678 }
 0x324   : > { %vm2712_vm5 = vcmp.eq.s32.totalorder %v4876_v9, 1  ;;  %vm2713_vm14 = vcmp.eq.s32.totalorder %v4878_v5, 1 }
 0x325   : > { %3773 = vmatpush3.bf16.msra.mxu1 %v2764_v58  ;;  %v2728_v48 = vsel %vm2712_vm5, %v4865_v42, -1e+30  ;;  %v2729_v16 = vsel %vm2713_vm14, %v4862_v55, -1e+30  ;;  %vm2830_vm5 = vcmask 523264  }
 0x326   : > { %v2740_v42 = vmax.f32 %v2724_v23, %v2728_v48  ;;  %v2819_v48 = vld [vmem:[#allocation4] sm:$0x3] }
 0x327   : > { %v4881_v12 = vpop.permute.xlu1 %2681  ;;  %v2335_v36 = vpop.permute.xlu0 %2334 }
 0x328   : > { %3775 = vmatmul.mubr.bf16.vlgmr.msra.gmra.mxu1 %v4104_v0  ;;  %v2373_v0 = vsel %vm2357_vm3, %v2001_v8, -1e+30  ;;  %vm2365_vm8 = vcmp.eq.s32.totalorder %v2335_v36, 1  ;;  %vm2714_vm15 = vcmp.eq.s32.totalorder %v4881_v12, 1  ;;  %v2741_v12 = vmax.f32 %v2725_v61, %v2729_v16  ;;  %v3885_v16 = vld [vmem:[%s5120_s9 + $0x34] ss:$8 sps:$4 sm:$0xff]  }
 0x329   : > { %v2389_v17 = vmax.f32 %v2373_v0, %v2377_v39  ;;  %v2381_v35 = vsel %vm2365_vm8, %v4855_v29, -1e+30  ;;  %v2730_v58 = vsel %vm2714_vm15, %v4858_v22, -1e+30  ;;  %v2739_v22 = vmax.f32 %v2723_v43, %v2727_v20 }
 0x32a   : > { %v2742_v14 = vmax.f32 %v2726_v24, %v2730_v58  ;;  %v3886_v58 = vld [vmem:[%s5120_s9 + $0x20] ss:$8 sps:$4 sm:$0xff]  }
 0x32b   : > { %v2338_v57 = vpop.permute.xlu1 %2337  ;;  %v2341_v37 = vpop.permute.xlu0 %2340  ;;  %v2393_v49 = vmax.f32 %v2389_v17, %v2381_v35  ;;  %v2410_v35 = vld [vmem:[#allocation5] sm:$0x1] }
 0x32c   : > { %vm2366_vm6 = vcmp.eq.s32.totalorder %v2338_v57, 1  ;;  %vm2367_vm3 = vcmp.eq.s32.totalorder %v2341_v37, 1 }
 0x32d   : > { %v2382_v60 = vsel %vm2366_vm6, %v4851_v27, -1e+30  ;;  %v2383_v51 = vsel %vm2367_vm3, %v4846_v62, -1e+30 }
 0x32e   : > { %v2394_v31 = vmax.f32 %v2390_v46, %v2382_v60  ;;  %v2395_v63 = vmax.f32 %v2391_v53, %v2383_v51 }
 0x32f   : > { %v2344_v44 = vpop.permute.xlu1 %2343  ;;  %v4884_v13 = vpop.permute.xlu0 %2684 }
 0x330   : > { %vm2368_vm9 = vcmp.eq.s32.totalorder %v2344_v44, 1  ;;  %vm2715_vm0 = vcmp.eq.s32.totalorder %v4884_v13, 1 }
 0x331   : > { %v2384_v38 = vsel %vm2368_vm9, %v4842_v56, -1e+30  ;;  %v2731_v37 = vsel %vm2715_vm0, %v4855_v29, -1e+30 }
 0x332   : > { %v2396_v4 = vmax.f32 %v2392_v59, %v2384_v38  ;;  %v2743_v33 = vmax.f32 %v2739_v22, %v2731_v37  ;;  %v3894_v37 = vld [vmem:[%s5120_s9 + $0x4] ss:$8 sps:$4 sm:$0xff]  }
 0x333   : > { %v4890_v6 = vpop.permute.xlu1 %2687  ;;  %v4892_v2 = vpop.permute.xlu0 %2690 }
 0x334   : > { %vm2716_vm1 = vcmp.eq.s32.totalorder %v4890_v6, 1  ;;  %vm2717_vm4 = vcmp.eq.s32.totalorder %v4892_v2, 1 }
 0x335   : > { %v2732_v44 = vsel %vm2716_vm1, %v4851_v27, -1e+30  ;;  %v2733_v5 = vsel %vm2717_vm4, %v4846_v62, -1e+30 }
 0x336   : > { %v2744_v13 = vmax.f32 %v2740_v42, %v2732_v44  ;;  %v2745_v27 = vmax.f32 %v2741_v12, %v2733_v5  ;;  %v3880_v42 = vld [vmem:[%s5120_s9 + $0x40] ss:$8 sps:$4 sm:$0xff]   ;;  %v2763_v5 = vld [vmem:[#allocation6] sm:$0x3] }
 0x337   : > { %v4898_v34 = vpop.permute.xlu1 %2693  ;;  %v2347_v25 = vpop.permute.xlu0 %2346  ;;  %v3892_v44 = vld [vmem:[%s5120_s9] ss:$8 sps:$4 sm:$0xff]   ;;  %v3900_v12 = vld [vmem:[%s5120_s9 + $0x84] ss:$8 sps:$4 sm:$0xff]  }
 0x338   : > { %vm2369_vm10 = vcmp.eq.s32.totalorder %v2347_v25, 1  ;;  %vm2718_vm7 = vcmp.eq.s32.totalorder %v4898_v34, 1 }
 0x339   : > { %v2385_v50 = vsel %vm2369_vm10, %v4835_v52, -1e+30  ;;  %v2734_v39 = vsel %vm2718_vm7, %v4842_v56, -1e+30  ;;  %vm2839_vm10 = vcmask 130048  }
 0x33a   : > { %v2397_v8 = vmax.f32 %v2393_v49, %v2385_v50  ;;  %v2746_v17 = vmax.f32 %v2742_v14, %v2734_v39  ;;  %v2825_v49 = vmul.f32 %v4823_v18, %v2819_v48  ;;  %v3871_v50 = vld [vmem:[%s5120_s9 + $0x70] ss:$8 sps:$4 sm:$0xff]   ;;  %v3898_v39 = vld [vmem:[%s5120_s9 + $0x80] ss:$8 sps:$4 sm:$0xff]  }
 0x33b   : > { %v2350_v28 = vpop.permute.xlu1 %2349  ;;  %v2353_v30 = vpop.permute.xlu0 %2352  ;;  %v3914_v48 = vld [vmem:[%s5124_s13 + $0x8] sm:$0xff]  }
 0x33c   : > { %vm2370_vm11 = vcmp.eq.s32.totalorder %v2350_v28, 1  ;;  %vm2371_vm12 = vcmp.eq.s32.totalorder %v2353_v30, 1  ;;  %2827 = vrot.lane.b32.xlu1 %v2825_v49, %s3987_s27  ;;  %v3915_v49 = vld [vmem:[%s5124_s13 + $0x40] sm:$0xff]  }
 0x33d   : > { %v2386_v10 = vsel %vm2370_vm11, %v4831_v54, -1e+30  ;;  %v2387_v11 = vsel %vm2371_vm12, %v4825_v19, -1e+30  ;;  %vm3003_vm11 = vcmask 261120  }
 0x33e   : > { %v2398_v47 = vmax.f32 %v2394_v31, %v2386_v10  ;;  %v2399_v36 = vmax.f32 %v2395_v63, %v2387_v11  ;;  %v3873_v63 = vld [vmem:[%s5120_s9 + $0x74] ss:$8 sps:$4 sm:$0xff]   ;;  %v3874_v11 = vld [vmem:[%s5120_s9 + $0x60] ss:$8 sps:$4 sm:$0xff]  }
 0x33f   : > { %v2356_v3 = vpop.permute.xlu1 %2355  ;;  %v2697_v15 = vpop.permute.xlu0 %2696  ;;  %3007 = vmatprep.subr.bf16.mxu0 %v3873_v63  ;;  %v2891_v63 = vld [vmem:[%s5121_s10] sm:$0x3] }
 0x340   : > { %vm2372_vm6 = vcmp.eq.s32.totalorder %v2356_v3, 1  ;;  %v2401_v55 = vmax.f32 %v2397_v8, %v2398_v47  ;;  %vm2719_vm8 = vcmp.eq.s32.totalorder %v2697_v15, 1  ;;  %v3876_v47 = vld [vmem:[%s5120_s9 + $0x64] ss:$8 sps:$4 sm:$0xff]   ;;  %3008 = vmatpush1.bf16.msra.mxu0 %v3871_v50  ;;  %v3879_v3 = vld [vmem:[%s5120_s9 + $0x54] ss:$8 sps:$4 sm:$0xff]  }
 0x341   : > { %v2388_v9 = vsel %vm2372_vm6, %v4827_v21, -1e+30  ;;  %v2735_v62 = vsel %vm2719_vm8, %v4835_v52, -1e+30  ;;  %3009 = vmatprep.subr.bf16.mxu0 %v3876_v47  ;;  %v3877_v15 = vld [vmem:[%s5120_s9 + $0x50] ss:$8 sps:$4 sm:$0xff]   ;;  %v2896_v47 = vrot.slane %v2891_v63, %v4557_v26 }
 0x342   : > { %v2400_v57 = vmax.f32 %v2396_v4, %v2388_v9  ;;  %v2747_v56 = vmax.f32 %v2743_v33, %v2735_v62  ;;  %v3882_v4 = vld [vmem:[%s5120_s9 + $0x44] ss:$8 sps:$4 sm:$0xff]   ;;  %v3883_v8 = vld [vmem:[%s5120_s9 + $0x30] ss:$8 sps:$4 sm:$0xff]  }
 0x343   : > { %v2700_v6 = vpop.permute.xlu1 %2699  ;;  %v2703_v2 = vpop.permute.xlu0 %2702  ;;  %v3888_v9 = vld [vmem:[%s5120_s9 + $0x24] ss:$8 sps:$4 sm:$0xff]   ;;  %v3903_v33 = vld [vmem:[%s5124_s13 + $0x70] sm:$0xff]  }
 0x344   : > { %v2402_v0 = vmax.f32 %v2399_v36, %v2400_v57  ;;  %vm2720_vm2 = vcmp.eq.s32.totalorder %v2700_v6, 1  ;;  %vm2721_vm3 = vcmp.eq.s32.totalorder %v2703_v2, 1  ;;  %3010 = vmatpush1.bf16.msra.mxu0 %v3874_v11  ;;  %v3891_v36 = vld [vmem:[%s5120_s9 + $0x14] ss:$8 sps:$4 sm:$0xff]   ;;  %v3889_v57 = vld [vmem:[%s5120_s9 + $0x10] ss:$8 sps:$4 sm:$0xff]  }
 0x345   : > { %v2736_v40 = vsel %vm2720_vm2, %v4831_v54, -1e+30  ;;  %v2737_v7 = vsel %vm2721_vm3, %v4825_v19, -1e+30  ;;  %3011 = vmatprep.subr.bf16.mxu0 %v3879_v3  ;;  %v3895_v6 = vld [vmem:[%s5120_s9 + $0x90] ss:$8 sps:$4 sm:$0xff]  }
 0x346   : > { %v2403_v29 = vmax.f32 %v2401_v55, %v2402_v0  ;;  %v2748_v34 = vmax.f32 %v2744_v13, %v2736_v40  ;;  %v2749_v53 = vmax.f32 %v2745_v27, %v2737_v7  ;;  %v3897_v55 = vld [vmem:[%s5120_s9 + $0x94] ss:$8 sps:$4 sm:$0xff]   ;;  %v3916_v50 = vld [vmem:[%s5124_s13] sm:$0xff]  }
 0x347   : > { %v2706_v45 = vpop.permute.xlu1 %2705  ;;  %v3901_v13 = vld [vmem:[%s5124_s13 + $0x78] sm:$0xff]   ;;  %v3904_v7 = vld [vmem:[%s5124_s13 + $0x30] sm:$0xff]   ;;  %v3050_v11 = vld [vmem:[%s5122_s11] sm:$0x3] }
 0x348   : > { %v2404_v32 = vrot.slane %v2403_v29, 4  ;;  %vm2722_vm9 = vcmp.eq.s32.totalorder %v2706_v45, 1  ;;  %v2751_v23 = vmax.f32 %v2747_v56, %v2748_v34  ;;  %3012 = vmatpush1.bf16.msra.mxu0 %v3877_v15  ;;  %3625 = vmatprep.subr.bf16.mxu1 %v3901_v13  ;;  %v3905_v45 = vld [vmem:[%s5124_s13 + $0x68] sm:$0xff]   ;;  %v3909_v34 = vld [vmem:[%s5124_s13 + $0x58] sm:$0xff]   ;;  %v2818_v56 = vld [vmem:[#allocation3] sm:$0x3] }
 0x349   : > { %v2738_v25 = vsel %vm2722_vm9, %v4827_v21, -1e+30  ;;  %v2760_v21 = vld [vmem:[#allocation5 + $0x1] sm:$0x1]  ;;  %3013 = vmatprep.subr.bf16.mxu0 %v3882_v4  ;;  %v3475_v13 = vld [vmem:[%s5125_s14] ss:$0 sm:$0xff] }
 0x34a   : > { %v2405_v46 = vmax.f32 %v2403_v29, %v2404_v32  ;;  %v2750_v54 = vmax.f32 %v2746_v17, %v2738_v25  ;;  %v3902_v29 = vld [vmem:[%s5124_s13 + $0x38] sm:$0xff]   ;;  %v3906_v17 = vld [vmem:[%s5124_s13 + $0x28] sm:$0xff]   ;;  %v3908_v32 = vld [vmem:[%s5124_s13 + $0x20] sm:$0xff]  }
 0x34b   : > { %3626 = vmatpush3.bf16.msra.mxu1 %v3902_v29  ;;  %v3910_v25 = vld [vmem:[%s5124_s13 + $0x18] sm:$0xff]  }
 0x34c   : > { %v2406_v43 = vrot.slane %v2405_v46, 2  ;;  %v2752_v59 = vmax.f32 %v2749_v53, %v2750_v54  ;;  %3014 = vmatpush1.bf16.msra.mxu0 %v3880_v42  ;;  %3627 = vmatprep.subr.bf16.mxu1 %v3903_v33  ;;  %v3055_v42 = vrot.slane %v3050_v11, %v4557_v26 }
 0x34d   : > { %3015 = vmatprep.subr.bf16.mxu0 %v3885_v16  ;;  %v3064_v16 = vld [vmem:[%s5123_s12] sm:$0x3] }
 0x34e   : > { %v2407_v61 = vmax.f32 %v2405_v46, %v2406_v43  ;;  %v2753_v60 = vmax.f32 %v2751_v23, %v2752_v59  ;;  %v2841_v46 = vld [vmem:[%s5118_s7] sm:$0x3]  ;;  %v2849_v59 = vsub.s32 1, %v4551_v41  ;;  %v3911_v41 = vld [vmem:[%s5124_s13 + $0x50] sm:$0xff]  }
 0x34f   : > { %3628 = vmatpush3.bf16.msra.mxu1 %v3904_v7  ;;  %v2846_v54 = vrot.slane %v2841_v46, %v4557_v26  ;;  %v2855_v43 = vld [vmem:[%s5119_s8] sm:$0x3] }
 0x350   : > { %v2408_v24 = vrot.slane %v2407_v61, 1  ;;  %v2754_v52 = vrot.slane %v2753_v60, 4  ;;  %3016 = vmatpush1.bf16.msra.mxu0 %v3883_v8  ;;  %3629 = vmatprep.subr.bf16.mxu1 %v3905_v45  ;;  %v2900_v3 = vrot.slane %v2891_v63, %v2849_v59 }
 0x351   : > { %3017 = vmatprep.subr.bf16.mxu0 %v3888_v9 }
 0x352   : > { %v2409_v19 = vmax.f32 %v2407_v61, %v2408_v24  ;;  %v2755_v28 = vmax.f32 %v2753_v60, %v2754_v52  ;;  %v2860_v61 = vrot.slane %v2855_v43, %v4557_v26  ;;  %v2850_v24 = vrot.slane %v2841_v46, %v2849_v59 }
 0x353   : > { %3630 = vmatpush3.bf16.msra.mxu1 %v3906_v17  ;;  %v2864_v52 = vrot.slane %v2855_v43, %v2849_v59 }
 0x354   : > { %v2411_v30 = vmax.f32 %v2410_v35, %v2409_v19  ;;  %v2756_v20 = vrot.slane %v2755_v28, 2  ;;  %3018 = vmatpush1.bf16.msra.mxu0 %v3886_v58 }
 0x355   : > { %3019 = vmatprep.subr.bf16.mxu0 %v3891_v36  ;;  %v3059_v36 = vrot.slane %v3050_v11, %v2849_v59 }
 0x356   : > { %2412 = vst [vmem:[#allocation5] sm:$0x1] %v2411_v30  ;;  %v2757_v51 = vmax.f32 %v2755_v28, %v2756_v20 }
 0x358   : > { %v2758_v31 = vrot.slane %v2757_v51, 1  ;;  %3020 = vmatpush1.bf16.msra.mxu0 %v3889_v57  ;;  %v3069_v57 = vrot.slane %v3064_v16, %v4557_v26  ;;  %v3918_v26 = vld [vmem:[%s5126_s15] sm:$0xff]  }
 0x359   : > { %3021 = vmatprep.subr.bf16.mxu0 %v3894_v37 }
 0x35a   : > { %v2759_v38 = vmax.f32 %v2757_v51, %v2758_v31 }
 0x35c   : > { %v2761_v10 = vmax.f32 %v2760_v21, %v2759_v38  ;;  %3022 = vmatpush1.bf16.msra.mxu0 %v3892_v44  ;;  %v3912_v38 = vld [vmem:[%s5124_s13 + $0x10] sm:$0xff]  }
 0x35d   : > { %3035 = vmatprep.subr.bf16.mxu0 %v3897_v55  ;;  %v3073_v55 = vrot.slane %v3064_v16, %v2849_v59 }
 0x35e   : > { %2762 = vst [vmem:[#allocation5 + $0x1] sm:$0x1] %v2761_v10  ;;  %v3913_v10 = vld [vmem:[%s5124_s13 + $0x48] sm:$0xff]  }
 0x360   : > { %3036 = vmatpush2.bf16.msra.mxu0 %v3895_v6 }
 0x361   : > { %3037 = vmatprep.subr.bf16.mxu0 %v3900_v12 }
 0x364   : > { %3038 = vmatpush2.bf16.msra.mxu0 %v3898_v39 }
 0x365   : > { %v2832_v19 = vld [vmem:[#allocation5] sm:$0x3] }
 0x3ae   : > { %v2828_v53 = vpop.permute.xlu1 %2827 }
 0x3af   : > { %v2831_v23 = vsel %vm2830_vm5, %v2818_v56, %v2828_v53 }
 0x3b0   : > { %v2853_v60 = vmul.f32 %v2846_v54, %v2831_v23 }
 0x3b2   : > { %v2867_v28 = vadd.f32 %v2860_v61, %v2853_v60 }
 0x3b4   : > { %v2869_v31 = vpack.c.bf16 %v2867_v28, %v2867_v28 }
 0x3e8   : > { %v2806_v2 = vpop.f32.mrf.mxu1 }
 0x3e9   : > { %v2812_v0 = vadd.f32 %v2806_v2, %v2763_v5 }
 0x3ea   : > { %v3776_v22 = vpop.f32.mrf.mxu1 }
 0x3eb   : > { %2813 = vst [vmem:[#allocation6] sm:$0x3] %v2812_v0 }
 0x3ec   : > { %v2809_v40 = vpop.f32.mrf.mxu1 }
 0x3ed   : > { %v3917_v40 = vld [vmem:[%s5126_s15 + $0x8] sm:$0xff]  }
 0x3ee   : > { %v3777_v14 = vpop.f32.mrf.mxu1 }
 0x3f2   : > { %v2833_v27 = vld [vmem:[#allocation6] sm:$0x3] }
 0x3f3   : > { %v2834_v62 = vmul.f32 %v2833_v27, %v4823_v18  ;;  %v3907_v18 = vld [vmem:[%s5124_s13 + $0x60] sm:$0xff]  }
 0x3f4   : > { %3631 = vmatprep.subr.bf16.mxu1 %v3907_v18 }
 0x3f5   : > { %2836 = vrot.lane.b32.xlu0 %v2834_v62, %s3988_s24  ;;  %3632 = vmatpush3.bf16.msra.mxu1 %v3908_v32 }
 0x3f6   : > { %3633 = vmatprep.subr.bf16.mxu1 %v3909_v34 }
 0x3f9   : > { %3634 = vmatpush3.bf16.msra.mxu1 %v3910_v25 }
 0x3fa   : > { %3635 = vmatprep.subr.bf16.mxu1 %v3911_v41 }
 0x3fd   : > { %3636 = vmatpush3.bf16.msra.mxu1 %v3912_v38 }
 0x3fe   : > { %3637 = vmatprep.subr.bf16.mxu1 %v3913_v10 }
 0x401   : > { %3638 = vmatpush3.bf16.msra.mxu1 %v3914_v48 }
 0x402   : > { %3639 = vmatprep.subr.bf16.mxu1 %v3915_v49 }
 0x405   : > { %3640 = vmatpush3.bf16.msra.mxu1 %v3916_v50 }
 0x406   : > { %3778 = vmatprep.subr.bf16.mxu1 %v3984_v1 }
 0x467   : > { %v2837_v35 = vpop.permute.xlu0 %2836 }
 0x468   : > { %v2840_v30 = vsel %vm2839_vm10, %v2832_v19, %v2837_v35 }
 0x469   : > { %v2854_v20 = vmul.f32 %v2850_v24, %v2840_v30 }
 0x46b   : > { %v2868_v51 = vadd.f32 %v2864_v52, %v2854_v20 }
 0x46d   : > { %v2870_v21 = vpack.c.bf16 %v2868_v51, %v2868_v51 }
 0x46f   : > { %3474 = vmatprep.mubr.msk.bf16.mxu0 %vm3003_vm11, %v2870_v21 }
 0x470   : > { %3040 = vmatmul.mubr.bf16.vlgmr.msra.gmra.mxu0 %v2869_v31 }
 0x530   : > { %v3041_v15 = vpop.f32.mrf.mxu0 }
 0x531   : > { %v3042_v4 = vadd.f32 %v3041_v15, %v2896_v47 }
 0x532   : > { %v3043_v8 = vpop.f32.mrf.mxu0 }
 0x533   : > { %v3048_v9 = vmax.f32 %v3042_v4, 0.0  ;;  %v3044_v58 = vadd.f32 %v3043_v8, %v2900_v3 }
 0x534   : > { %v3045_v37 = vpop.f32.mrf.mxu0 }
 0x535   : > { %v3062_v44 = vmul.f32 %v3055_v42, %v3048_v9  ;;  %v3049_v5 = vmax.f32 %v3044_v58, 0.0 }
 0x536   : > { %v3046_v6 = vpop.f32.mrf.mxu0 }
 0x537   : > { %v3063_v2 = vmul.f32 %v3059_v36, %v3049_v5  ;;  %v3076_v0 = vadd.f32 %v3069_v57, %v3062_v44 }
 0x539   : > { %v3077_v22 = vadd.f32 %v3073_v55, %v3063_v2  ;;  %v3078_v39 = vpack.c.bf16 %v3076_v0, %v3076_v0 }
 0x53b   : > { %v3079_v12 = vpack.c.bf16 %v3077_v22, %v3077_v22 }
 0x53d   : > { %3247 = vmatprep.mubr.bf16.mxu1 %v3079_v12 }
 0x53e   : > { %3248 = vmatmul.mubr.bf16.vlgmr.msra.gmra.mxu1 %v3078_v39 }
 0x53f   : > { %3782 = vmatprep.mubr.msk.bf16.mxu1 %vm3985_vm13, %v3984_v1  ;;  %3779 = vmatpush3.bf16.msra.mxu1 %v3917_v40  ;;  %vm3323_vm13 = vcmask 17408  }
 0x540   : > { %3780 = vmatprep.subr.bf16.mxu1 %v3984_v1  ;;  %v3492_v1 = vld [vmem:[%s5127_s16] ss:$0 sm:$0xff] }
 0x543   : > { %3781 = vmatpush3.bf16.msra.mxu1 %v3918_v26 }
 0x5fe   : > { %v3641_v14 = vpop.f32.mrf.mxu1 }
 0x600   : > { %v3642_v29 = vpop.f32.mrf.mxu1 }
 0x601   : > { %v3643_v33 = vadd.f32 %v3642_v29, %v3641_v14 }
 0x602   : > { %v3644_v27 = vpop.f32.mrf.mxu1 }
 0x603   : > { %v3250_v62 = vadd.f32 %v3643_v33, %v3475_v13 }
 0x604   : > { %v3645_v7 = vpop.f32.mrf.mxu1 }
 0x605   : > { %v3255_v45 = vmax.f32 %v3250_v62, 0.0 }
 0x607   : > { %v3256_v17 = vpack.c.bf16 %v3255_v45, %v3255_v45 }
 0x609   : > { %3783 = vmatmul.mubr.msk.bf16.vlgmr.msra.gmra.mxu1 %vm3003_vm11, %v3256_v17 }
 0x6c9   : > { %v3317_v18 = vpop.f32.mrf.mxu1 }
 0x6ca   : > { %v3318_v32 = vadd.f32 %v3492_v1, %v3317_v18 }
 0x6cb   : > { %v3784_v34 = vpop.f32.mrf.mxu1 }
 0x6cc   : > { %v3324_v25 = vsel %vm3323_vm13, %v3318_v32, -inf }
 0x6cd   : > { %3325 = vmax.xlane.f32.xlu0 %v3324_v25  ;;  %v3320_v46 = vpop.f32.mrf.mxu1 }
 0x6cf   : > { %v3785_v56 = vpop.f32.mrf.mxu1 }
 0x756   : > { %v3326_v53 = vpop.xlane.xlu0 %3325 }
 0x757   : > { %v3327_v54 = vsub.f32 %v3318_v32, %v3326_v53 }
 0x759   : > { %v3328_v43 = vmul.f32 1.442695, %v3327_v54 }
 0x75b   : > { %3919 = vpow2.f32 %v3328_v43 }
 0x768   : > { %v3920_v23 = vpop.eup %3919 }
 0x769   : > { %v3330_v59 = vsel %vm3323_vm13, %v3920_v23, 0.0 }
 0x76a   : > { %3331 = vadd.xlane.f32.xlu1 %v3330_v59 }
 0x7f3   : > { %v3332_v61 = vpop.xlane.xlu1 %3331 }
 0x7f4   : > { %3921 = vlog2.f32 %v3332_v61 }
 0x801   : > { %v3922_v60 = vpop.eup %3921 }
 0x802   : > { %v3334_v24 = vmul.f32 0.6931472, %v3922_v60 }
 0x804   : > { %v3335_v52 = vsub.f32 %v3327_v54, %v3334_v24 }
 0x806   : > { %3336 = vst.msk [vmem:[#allocation7] sm:$0x3] %vm3323_vm13, %v3335_v52 }
 0x807 PF: > { %s5197_s1 = sadd.s32 4294967295, %s3973_s26   ;;  %s3989_s23 = smov [#allocation7]  }
 0x808   : > { %p5087_p6 = scmp.eq.s32.totalorder %s5197_s1, 1  ;;  %s3344_s2 = sshll.u32 %s3989_s23, 4  ;;  %s3345_s2 = int_to_ptr.vmem [resolvable:$true] %s3344_s2 }
 0x809   : > { %s3923_s27 = scalar_lea.vmem %s3345_s2, 32  ;;  %p3930_p10 = scmp.lt.s32.totalorder %s3345_s2, %s3345_s2 }
 0x80a   : > { %p3924_p7 = scmp.ne.s32.totalorder %s3345_s2, %s3923_s27  ;;  %p3931_p11 = scmp.lt.s32.totalorder %s3923_s27, %s3923_s27 }
 0x80c   : > { %p3925_p8 = pnand %p3924_p7, %p5087_p6  ;;  %p3932_p12 = por %p3931_p11, %p3930_p10 }
 0x80e   : > { %p3926_p9 = pneg %p3925_p8 }
 0x810   : > { %p3933_p13 = pnand %p3932_p12, %p3926_p9 }
 0x812   : > { %3936 = shalt.err (!%p3933_p13)
}
 0x813   : > { %3787 = dma.vmem_to_hbm [thread:$0]  (%p5087_p6), %s3345_s2, 32, %s5128_s17, [#allocation8]  }
 0x814   : > { %3960 = dma.done.wait (%p5087_p6), [#allocation8], 32  }
 0x815   : > { %3962 = vsyncadd (%p5087_p6), [#allocation8], 4294967264 }
 0x816 PF: > { %s28_s26 = sadd.s32 1, %s3973_s26   ;;  %s5199_s24 = smov %s3969_s25 }
 0x817   : > { %p25_p0 = scmp.ge.s32.totalorder %s28_s26, 4   ;;  %s5200_s25 = smov %s5202_s28 }
 0x819   :  { %27 = sbr.rel (!%p25_p0) target bundleno = 6 (0x6), region = 136 }
 0x81e   :  { %3357 = vsyncpa [#allocation8], 1 }
 0x81f   :  { %3359 = vsyncpa [#allocation8 + $0x1], 1 }

</bundles_post_ra>
